<compile_context>
chip_gen: v7x
topology: tpu7x:2x2x1
jax: 0.10.0
libtpu: 0.0.40
codegen_flags: <defaults>
</compile_context>

<pallas_src>
import numpy as np
import jax
import jax.numpy as jnp
from jax.experimental import pallas as pl
from jax.experimental.pallas import tpu as pltpu

MATMUL_DTYPE = jnp.bfloat16      # MXU input dtype (accumulation stays f32)
INTERLAYER_DTYPE = jnp.bfloat16  # conv1 -> conv2 activation dtype
LANE = 128


def _round_up(x, m):
    return (x + m - 1) // m * m


# ---------------------------------------------------------------------------
# Flattened, zero-halo'd activation layout helpers
#   image (C, H, W) -> padded (C, H+2, W+2) -> flattened (C, Mimg) with the
#   spatial axis on lanes; halo + lane-pad positions are exact zeros so the
#   next conv layer can reuse them as its padding.
# ---------------------------------------------------------------------------
def _flat_geom(H, W):
    Hp, Wp = H + 2, W + 2
    Msp = Hp * Wp
    Mimg = _round_up(Msp, LANE)
    return Hp, Wp, Msp, Mimg


def nchw_to_flat(x):
    N, C, H, W = x.shape
    _, _, Msp, Mimg = _flat_geom(H, W)
    xp = jnp.pad(x, ((0, 0), (0, 0), (1, 1), (1, 1)))
    xf = xp.reshape(N, C, Msp)
    if Mimg != Msp:
        xf = jnp.pad(xf, ((0, 0), (0, 0), (0, Mimg - Msp)))
    return xf


def flat_to_nchw(xf, H, W):
    N, C, _ = xf.shape
    Hp, Wp, Msp, _ = _flat_geom(H, W)
    return xf[:, :, :Msp].reshape(N, C, Hp, Wp)[:, :, 1:H + 1, 1:W + 1]


def _interior_mask(H, W):
    Hp, Wp, Msp, Mimg = _flat_geom(H, W)
    m = np.zeros((Hp, Wp), np.float32)
    m[1:H + 1, 1:W + 1] = 1.0
    out = np.zeros((1, Mimg), np.float32)
    out[0, :Msp] = m.reshape(-1)
    return jnp.asarray(out)


# ---------------------------------------------------------------------------
# Fused Conv3x3(pad=1) + BatchNorm(eval) + ReLU (+ fused 2x2 MaxPool) kernel
# ---------------------------------------------------------------------------
def _make_conv_kernel(deltas, Wp, Ho, Wo, mimg, with_pool):
    def kernel(x_ref, w_ref, b_ref, m_ref, o_ref, *rest):
        if with_pool:
            p_ref, acc_ref = rest
        else:
            (acc_ref,) = rest
        k = pl.program_id(2)

        @pl.when(k == 0)
        def _init():
            acc_ref[...] = jnp.zeros_like(acc_ref)

        # In-VMEM im2col: 9 lane-rotated views of the zero-halo'd image, one
        # MXU matmul per tap, f32 accumulation.  The roll happens on an f32
        # copy (exact) and the MXU operands are bf16.
        xv = x_ref[0].astype(jnp.float32)            # (cin_blk, Mimg)
        part = None
        for t, d in enumerate(deltas):
            xs = xv if d == 0 else pltpu.roll(xv, shift=(-d) % mimg, axis=1)
            contrib = jnp.dot(w_ref[t], xs.astype(MATMUL_DTYPE),
                              preferred_element_type=jnp.float32)
            part = contrib if part is None else part + contrib
        acc_ref[...] += part

        @pl.when(k == pl.num_programs(2) - 1)
        def _finalize():
            # BN scale already folded into the weights -> bias + ReLU only.
            # The interior mask keeps the halo of the output exactly zero so
            # the next conv layer can use it as its padding.
            y = jnp.maximum(acc_ref[...] + b_ref[...], 0.0) * m_ref[...]
            o_ref[0] = y.astype(o_ref.dtype)
            if with_pool:
                # Fused 2x2/2 maxpool epilogue: vertical max of the two rows
                # of every pool window, written row-compacted; the tiny
                # horizontal pair-max finishes in the wrapper.
                for ho in range(Ho):
                    base = (2 * ho + 1) * Wp + 1
                    r0 = o_ref[0, :, pl.ds(base, 2 * Wo)]
                    r1 = o_ref[0, :, pl.ds(base + Wp, 2 * Wo)]
                    p_ref[0, :, pl.ds(ho * 2 * Wo, 2 * Wo)] = jnp.maximum(r0, r1)
    return kernel


def conv3x3_bn_relu_flat(x_flat, w, conv_b, gamma, beta, run_mean, run_var, *,
                         H, W, eps=1e-5, out_dtype=jnp.float32,
                         with_pool=False):
    """Conv2d(3x3, stride 1, pad 1, bias) + BatchNorm2d(eval) + ReLU
    (+ fused MaxPool 2x2) on an activation in the flattened zero-halo'd
    (N, Cin, Mimg) layout; returns the output in the same layout."""
    N, Cin_in, Mimg = x_flat.shape
    Cout, Cin = w.shape[0], w.shape[1]
    assert Cin_in == Cin
    assert Cout % 8 == 0, "TODO(synk): pad odd out-channel counts"
    Hp, Wp, Msp, Mimg2 = _flat_geom(H, W)
    assert Mimg == Mimg2
    Ho, Wo = H // 2, W // 2

    # Fold conv bias + BatchNorm(eval) into the weights / a per-channel bias.
    inv_std = jax.lax.rsqrt(run_var + eps)
    scale = gamma * inv_std                                        # (Cout,)
    bias = (beta + (conv_b - run_mean) * scale).reshape(Cout, 1)
    bias = bias.astype(jnp.float32)
    # (Cout, Cin, 3, 3) * scale -> tap-major (9, Cout, Cin); cast after fold.
    w9 = (w * scale[:, None, None, None]).transpose(2, 3, 0, 1)
    w9 = w9.reshape(9, Cout, Cin).astype(MATMUL_DTYPE)

    x_in = x_flat.astype(MATMUL_DTYPE)

    # Pad the contraction (Cin) axis to a sublane multiple.
    Cin_p = _round_up(Cin, 8)
    if Cin_p != Cin:
        x_in = jnp.pad(x_in, ((0, 0), (0, Cin_p - Cin), (0, 0)))
        w9 = jnp.pad(w9, ((0, 0), (0, 0), (0, Cin_p - Cin)))

    mask = _interior_mask(H, W)

    # Tap offsets in the flattened padded image: (dh-1)*Wp + (dw-1).
    deltas = [(dh - 1) * Wp + (dw - 1) for dh in range(3) for dw in range(3)]

    # Channel blocking.  The Cin axis is the reduction axis (P3, f32 VMEM
    # accumulator); one block at these sizes, 256-channel chunks for big
    # channel counts so per-step VMEM stays bounded on v7x / v5e.
    if Cin_p <= 256:
        cin_blk = Cin_p
    elif Cin_p % 256 == 0:
        cin_blk = 256
    else:
        cin_blk = Cin_p   # TODO(synk): remainder path for odd channel counts
    if Cout <= 256:
        cout_blk = Cout
    elif Cout % 256 == 0:
        cout_blk = 256
    else:
        cout_blk = Cout

    grid = (N, Cout // cout_blk, Cin_p // cin_blk)

    x_spec = pl.BlockSpec((1, cin_blk, Mimg), lambda n, co, k: (n, k, 0))
    w_spec = pl.BlockSpec((9, cout_blk, cin_blk), lambda n, co, k: (0, co, k))
    b_spec = pl.BlockSpec((cout_blk, 1), lambda n, co, k: (co, 0))
    m_spec = pl.BlockSpec((1, Mimg), lambda n, co, k: (0, 0))
    o_spec = pl.BlockSpec((1, cout_blk, Mimg), lambda n, co, k: (n, co, 0))

    out_shape = jax.ShapeDtypeStruct((N, Cout, Mimg), out_dtype)
    out_specs = o_spec
    if with_pool:
        pool_lanes = Ho * 2 * Wo
        out_shape = (out_shape,
                     jax.ShapeDtypeStruct((N, Cout, pool_lanes), jnp.float32))
        out_specs = (o_spec,
                     pl.BlockSpec((1, cout_blk, pool_lanes),
                                  lambda n, co, k: (n, co, 0)))

    kernel = _make_conv_kernel(deltas, Wp, Ho, Wo, Mimg, with_pool)
    return pl.pallas_call(
        kernel,
        out_shape=out_shape,
        grid=grid,
        in_specs=[x_spec, w_spec, b_spec, m_spec],
        out_specs=out_specs,
        scratch_shapes=[pltpu.VMEM((cout_blk, Mimg), jnp.float32)],
        compiler_params=pltpu.CompilerParams(
            dimension_semantics=("parallel", "parallel", "arbitrary"),
            vmem_limit_bytes=32 * 1024 * 1024),
    )(x_in, w9, bias, mask)


# ---------------------------------------------------------------------------
# Encoder: params + forward (+ pure-JAX reference)
# ---------------------------------------------------------------------------
def init_params(key, cin, cout):
    ks = jax.random.split(key, 10)

    def conv_init(k, co, ci):
        bound = 1.0 / jnp.sqrt(float(ci * 9))
        kw, kb = jax.random.split(k)
        w = jax.random.uniform(kw, (co, ci, 3, 3), jnp.float32, -bound, bound)
        b = jax.random.uniform(kb, (co,), jnp.float32, -bound, bound)
        return w, b

    w1, b1 = conv_init(ks[0], cout, cin)
    w2, b2 = conv_init(ks[1], cout, cout)
    return dict(
        conv1_w=w1, conv1_b=b1,
        bn1_g=1.0 + 0.1 * jax.random.normal(ks[2], (cout,), jnp.float32),
        bn1_b=0.1 * jax.random.normal(ks[3], (cout,), jnp.float32),
        bn1_m=0.1 * jax.random.normal(ks[4], (cout,), jnp.float32),
        bn1_v=1.0 + 0.1 * jax.random.uniform(ks[5], (cout,), jnp.float32),
        conv2_w=w2, conv2_b=b2,
        bn2_g=1.0 + 0.1 * jax.random.normal(ks[6], (cout,), jnp.float32),
        bn2_b=0.1 * jax.random.normal(ks[7], (cout,), jnp.float32),
        bn2_m=0.1 * jax.random.normal(ks[8], (cout,), jnp.float32),
        bn2_v=1.0 + 0.1 * jax.random.uniform(ks[9], (cout,), jnp.float32),
    )


def encoder_forward(x_nchw, p):
    N, _, H, W = x_nchw.shape
    Cout = p["conv2_w"].shape[0]
    Ho, Wo = H // 2, W // 2

    xf = nchw_to_flat(x_nchw)

    # conv1 emits its activation directly in the flattened zero-halo'd bf16
    # layout that conv2 consumes -- no transpose / re-pad between the layers.
    h1 = conv3x3_bn_relu_flat(
        xf, p["conv1_w"], p["conv1_b"], p["bn1_g"], p["bn1_b"],
        p["bn1_m"], p["bn1_v"], H=H, W=W, out_dtype=INTERLAYER_DTYPE)

    h2, pool_rows = conv3x3_bn_relu_flat(
        h1, p["conv2_w"], p["conv2_b"], p["bn2_g"], p["bn2_b"],
        p["bn2_m"], p["bn2_v"], H=H, W=W, out_dtype=jnp.float32,
        with_pool=True)

    feat = flat_to_nchw(h2, H, W)
    # Finish the fused maxpool: horizontal pair-max on the tiny row-reduced
    # tensor (N, Cout, Ho*2*Wo) emitted by the conv2 epilogue.
    v = pool_rows.reshape(N, Cout, Ho, Wo, 2)
    pooled = jnp.maximum(v[..., 0], v[..., 1])
    return feat, pooled


def encoder_reference(x, p, eps=1e-5):
    """Pure-JAX reference (eval-mode BatchNorm) for correctness checking."""
    def block(h, w, b, g, beta, m, v):
        y = jax.lax.conv_general_dilated(
            h, w, (1, 1), ((1, 1), (1, 1)),
            dimension_numbers=("NCHW", "OIHW", "NCHW"),
            precision=jax.lax.Precision.HIGHEST)
        y = y + b[None, :, None, None]
        y = (y - m[None, :, None, None]) * jax.lax.rsqrt(
            v[None, :, None, None] + eps)
        y = y * g[None, :, None, None] + beta[None, :, None, None]
        return jnp.maximum(y, 0.0)

    h = block(x, p["conv1_w"], p["conv1_b"],
              p["bn1_g"], p["bn1_b"], p["bn1_m"], p["bn1_v"])
    h = block(h, p["conv2_w"], p["conv2_b"],
              p["bn2_g"], p["bn2_b"], p["bn2_m"], p["bn2_v"])
    pooled = jax.lax.reduce_window(h, -jnp.inf, jax.lax.max,
                                   (1, 1, 2, 2), (1, 1, 2, 2), "VALID")
    return h, pooled


if __name__ == "__main__":
    key = jax.random.PRNGKey(0)
    k_x, k_p = jax.random.split(key)

    N, Cin, Cout, H, W = 2, 4, 8, 16, 16
    x = jax.random.normal(k_x, (N, Cin, H, W), jnp.float32)
    params = init_params(k_p, Cin, Cout)

    fwd = jax.jit(encoder_forward)
    feat, pooled = fwd(x, params)
    feat = jax.block_until_ready(feat)
    pooled = jax.block_until_ready(pooled)

    assert feat.shape == (N, Cout, H, W), feat.shape
    assert pooled.shape == (N, Cout, H // 2, W // 2), pooled.shape
    assert bool(jnp.all(jnp.isfinite(feat)))
    assert bool(jnp.all(jnp.isfinite(pooled)))

    # Correctness vs. pure-JAX f32 reference.  Tolerance absorbs the bf16 MXU
    # inputs / bf16 inter-layer activation (f32 accumulation + f32 epilogue).
    ref_feat, ref_pooled = encoder_reference(x, params)
    err_f = float(jnp.max(jnp.abs(feat - ref_feat)))
    err_p = float(jnp.max(jnp.abs(pooled - ref_pooled)))
    assert err_f < 6e-2 and err_p < 6e-2, (err_f, err_p)

    print("KERNEL_OK")
</pallas_src>

<mosaic_0001>
module attributes {stable_mosaic.version = 11 : i64} {
  func.func @kernel(%arg0: i32, %arg1: i32, %arg2: i32, %arg3: memref<1x8x384xbf16, #tpu.memory_space<vmem>>, %arg4: memref<9x8x8xbf16, #tpu.memory_space<vmem>>, %arg5: memref<8x1xf32, #tpu.memory_space<vmem>>, %arg6: memref<1x384xf32, #tpu.memory_space<vmem>>, %arg7: memref<1x8x384xbf16, #tpu.memory_space<vmem>>, %arg8: memref<8x384xf32, #tpu.memory_space<vmem>>) attributes {dimension_semantics = [#tpu.dimension_semantics<parallel>, #tpu.dimension_semantics<parallel>, #tpu.dimension_semantics<arbitrary>], iteration_bounds = array<i64: 2, 1, 1>, scalar_prefetch = 0 : i64, scratch_operands = 1 : i64, tpu.core_type = #tpu.core_type<tc>, window_params = [{transform_indices = @transform_0, window_bounds = array<i64: 1, 8, 384>}, {transform_indices = @transform_1, window_bounds = array<i64: 9, 8, 8>}, {transform_indices = @transform_2, window_bounds = array<i64: 8, 1>}, {pipeline_mode = #tpu.pipeline_mode<synchronous>, transform_indices = @transform_3, window_bounds = array<i64: 1, 384>}, {transform_indices = @transform_4, window_bounds = array<i64: 1, 8, 384>}]} {
    %c0_i32 = arith.constant 0 : i32
    %0 = arith.cmpi eq, %arg2, %c0_i32 : i32
    %1 = arith.extui %0 : i1 to i32
    %c0_i32_0 = arith.constant 0 : i32
    %2 = arith.cmpi ne, %1, %c0_i32_0 : i32
    scf.if %2 {
      %cst_36 = arith.constant 0.000000e+00 : f32
      %64 = vector.broadcast %cst_36 : f32 to vector<8x384xf32>
      %c0_37 = arith.constant 0 : index
      %c0_38 = arith.constant 0 : index
      %65 = vector.load %arg8[%c0_37, %c0_38] : memref<8x384xf32, #tpu.memory_space<vmem>>, vector<8x384xf32>
      tpu.vector_store %arg8[%c0_37, %c0_38], %64 {strides = array<i32>} : memref<8x384xf32, #tpu.memory_space<vmem>>, vector<8x384xf32>,
    } else {
    }
    %c0 = arith.constant 0 : index
    %c0_1 = arith.constant 0 : index
    %c0_2 = arith.constant 0 : index
    %3 = vector.load %arg3[%c0, %c0_1, %c0_2] : memref<1x8x384xbf16, #tpu.memory_space<vmem>>, vector<1x8x384xbf16>
    %4 = vector.shape_cast %3 : vector<1x8x384xbf16> to vector<8x384xbf16>
    %5 = arith.extf %4 : vector<8x384xbf16> to vector<8x384xf32>
    %c19_i32 = arith.constant 19 : i32
    %6 = tpu.dynamic_rotate %5 by %c19_i32 dim 1 : vector<8x384xf32>, i32 -> vector<8x384xf32>
    %c0_3 = arith.constant 0 : index
    %c0_4 = arith.constant 0 : index
    %c0_5 = arith.constant 0 : index
    %7 = vector.load %arg4[%c0_3, %c0_4, %c0_5] : memref<9x8x8xbf16, #tpu.memory_space<vmem>>, vector<1x8x8xbf16>
    %8 = vector.shape_cast %7 : vector<1x8x8xbf16> to vector<8x8xbf16>
    %9 = arith.truncf %6 : vector<8x384xf32> to vector<8x384xbf16>
    %cst = arith.constant dense<0.000000e+00> : vector<8x384xf32>
    %10 = tpu.matmul %8, %9, %cst {dimension_numbers = #tpu.dot_dimension_numbers<[1], [0], [0], [1], [0, 0, 1, 1], [], []>} : vector<8x8xbf16>, vector<8x384xbf16>, vector<8x384xf32> -> vector<8x384xf32>
    %c18_i32 = arith.constant 18 : i32
    %11 = tpu.dynamic_rotate %5 by %c18_i32 dim 1 : vector<8x384xf32>, i32 -> vector<8x384xf32>
    %c1 = arith.constant 1 : index
    %c0_6 = arith.constant 0 : index
    %c0_7 = arith.constant 0 : index
    %12 = vector.load %arg4[%c1, %c0_6, %c0_7] : memref<9x8x8xbf16, #tpu.memory_space<vmem>>, vector<1x8x8xbf16>
    %13 = vector.shape_cast %12 : vector<1x8x8xbf16> to vector<8x8xbf16>
    %14 = arith.truncf %11 : vector<8x384xf32> to vector<8x384xbf16>
    %cst_8 = arith.constant dense<0.000000e+00> : vector<8x384xf32>
    %15 = tpu.matmul %13, %14, %cst_8 {dimension_numbers = #tpu.dot_dimension_numbers<[1], [0], [0], [1], [0, 0, 1, 1], [], []>} : vector<8x8xbf16>, vector<8x384xbf16>, vector<8x384xf32> -> vector<8x384xf32>
    %16 = arith.addf %10, %15 : vector<8x384xf32>
    %c17_i32 = arith.constant 17 : i32
    %17 = tpu.dynamic_rotate %5 by %c17_i32 dim 1 : vector<8x384xf32>, i32 -> vector<8x384xf32>
    %c2 = arith.constant 2 : index
    %c0_9 = arith.constant 0 : index
    %c0_10 = arith.constant 0 : index
    %18 = vector.load %arg4[%c2, %c0_9, %c0_10] : memref<9x8x8xbf16, #tpu.memory_space<vmem>>, vector<1x8x8xbf16>
    %19 = vector.shape_cast %18 : vector<1x8x8xbf16> to vector<8x8xbf16>
    %20 = arith.truncf %17 : vector<8x384xf32> to vector<8x384xbf16>
    %cst_11 = arith.constant dense<0.000000e+00> : vector<8x384xf32>
    %21 = tpu.matmul %19, %20, %cst_11 {dimension_numbers = #tpu.dot_dimension_numbers<[1], [0], [0], [1], [0, 0, 1, 1], [], []>} : vector<8x8xbf16>, vector<8x384xbf16>, vector<8x384xf32> -> vector<8x384xf32>
    %22 = arith.addf %16, %21 : vector<8x384xf32>
    %c1_i32 = arith.constant 1 : i32
    %23 = tpu.dynamic_rotate %5 by %c1_i32 dim 1 : vector<8x384xf32>, i32 -> vector<8x384xf32>
    %c3 = arith.constant 3 : index
    %c0_12 = arith.constant 0 : index
    %c0_13 = arith.constant 0 : index
    %24 = vector.load %arg4[%c3, %c0_12, %c0_13] : memref<9x8x8xbf16, #tpu.memory_space<vmem>>, vector<1x8x8xbf16>
    %25 = vector.shape_cast %24 : vector<1x8x8xbf16> to vector<8x8xbf16>
    %26 = arith.truncf %23 : vector<8x384xf32> to vector<8x384xbf16>
    %cst_14 = arith.constant dense<0.000000e+00> : vector<8x384xf32>
    %27 = tpu.matmul %25, %26, %cst_14 {dimension_numbers = #tpu.dot_dimension_numbers<[1], [0], [0], [1], [0, 0, 1, 1], [], []>} : vector<8x8xbf16>, vector<8x384xbf16>, vector<8x384xf32> -> vector<8x384xf32>
    %28 = arith.addf %22, %27 : vector<8x384xf32>
    %c4 = arith.constant 4 : index
    %c0_15 = arith.constant 0 : index
    %c0_16 = arith.constant 0 : index
    %29 = vector.load %arg4[%c4, %c0_15, %c0_16] : memref<9x8x8xbf16, #tpu.memory_space<vmem>>, vector<1x8x8xbf16>
    %30 = vector.shape_cast %29 : vector<1x8x8xbf16> to vector<8x8xbf16>
    %31 = arith.truncf %5 : vector<8x384xf32> to vector<8x384xbf16>
    %cst_17 = arith.constant dense<0.000000e+00> : vector<8x384xf32>
    %32 = tpu.matmul %30, %31, %cst_17 {dimension_numbers = #tpu.dot_dimension_numbers<[1], [0], [0], [1], [0, 0, 1, 1], [], []>} : vector<8x8xbf16>, vector<8x384xbf16>, vector<8x384xf32> -> vector<8x384xf32>
    %33 = arith.addf %28, %32 : vector<8x384xf32>
    %c383_i32 = arith.constant 383 : i32
    %34 = tpu.dynamic_rotate %5 by %c383_i32 dim 1 : vector<8x384xf32>, i32 -> vector<8x384xf32>
    %c5 = arith.constant 5 : index
    %c0_18 = arith.constant 0 : index
    %c0_19 = arith.constant 0 : index
    %35 = vector.load %arg4[%c5, %c0_18, %c0_19] : memref<9x8x8xbf16, #tpu.memory_space<vmem>>, vector<1x8x8xbf16>
    %36 = vector.shape_cast %35 : vector<1x8x8xbf16> to vector<8x8xbf16>
    %37 = arith.truncf %34 : vector<8x384xf32> to vector<8x384xbf16>
    %cst_20 = arith.constant dense<0.000000e+00> : vector<8x384xf32>
    %38 = tpu.matmul %36, %37, %cst_20 {dimension_numbers = #tpu.dot_dimension_numbers<[1], [0], [0], [1], [0, 0, 1, 1], [], []>} : vector<8x8xbf16>, vector<8x384xbf16>, vector<8x384xf32> -> vector<8x384xf32>
    %39 = arith.addf %33, %38 : vector<8x384xf32>
    %c367_i32 = arith.constant 367 : i32
    %40 = tpu.dynamic_rotate %5 by %c367_i32 dim 1 : vector<8x384xf32>, i32 -> vector<8x384xf32>
    %c6 = arith.constant 6 : index
    %c0_21 = arith.constant 0 : index
    %c0_22 = arith.constant 0 : index
    %41 = vector.load %arg4[%c6, %c0_21, %c0_22] : memref<9x8x8xbf16, #tpu.memory_space<vmem>>, vector<1x8x8xbf16>
    %42 = vector.shape_cast %41 : vector<1x8x8xbf16> to vector<8x8xbf16>
    %43 = arith.truncf %40 : vector<8x384xf32> to vector<8x384xbf16>
    %cst_23 = arith.constant dense<0.000000e+00> : vector<8x384xf32>
    %44 = tpu.matmul %42, %43, %cst_23 {dimension_numbers = #tpu.dot_dimension_numbers<[1], [0], [0], [1], [0, 0, 1, 1], [], []>} : vector<8x8xbf16>, vector<8x384xbf16>, vector<8x384xf32> -> vector<8x384xf32>
    %45 = arith.addf %39, %44 : vector<8x384xf32>
    %c366_i32 = arith.constant 366 : i32
    %46 = tpu.dynamic_rotate %5 by %c366_i32 dim 1 : vector<8x384xf32>, i32 -> vector<8x384xf32>
    %c7 = arith.constant 7 : index
    %c0_24 = arith.constant 0 : index
    %c0_25 = arith.constant 0 : index
    %47 = vector.load %arg4[%c7, %c0_24, %c0_25] : memref<9x8x8xbf16, #tpu.memory_space<vmem>>, vector<1x8x8xbf16>
    %48 = vector.shape_cast %47 : vector<1x8x8xbf16> to vector<8x8xbf16>
    %49 = arith.truncf %46 : vector<8x384xf32> to vector<8x384xbf16>
    %cst_26 = arith.constant dense<0.000000e+00> : vector<8x384xf32>
    %50 = tpu.matmul %48, %49, %cst_26 {dimension_numbers = #tpu.dot_dimension_numbers<[1], [0], [0], [1], [0, 0, 1, 1], [], []>} : vector<8x8xbf16>, vector<8x384xbf16>, vector<8x384xf32> -> vector<8x384xf32>
    %51 = arith.addf %45, %50 : vector<8x384xf32>
    %c365_i32 = arith.constant 365 : i32
    %52 = tpu.dynamic_rotate %5 by %c365_i32 dim 1 : vector<8x384xf32>, i32 -> vector<8x384xf32>
    %c8 = arith.constant 8 : index
    %c0_27 = arith.constant 0 : index
    %c0_28 = arith.constant 0 : index
    %53 = vector.load %arg4[%c8, %c0_27, %c0_28] : memref<9x8x8xbf16, #tpu.memory_space<vmem>>, vector<1x8x8xbf16>
    %54 = vector.shape_cast %53 : vector<1x8x8xbf16> to vector<8x8xbf16>
    %55 = arith.truncf %52 : vector<8x384xf32> to vector<8x384xbf16>
    %cst_29 = arith.constant dense<0.000000e+00> : vector<8x384xf32>
    %56 = tpu.matmul %54, %55, %cst_29 {dimension_numbers = #tpu.dot_dimension_numbers<[1], [0], [0], [1], [0, 0, 1, 1], [], []>} : vector<8x8xbf16>, vector<8x384xbf16>, vector<8x384xf32> -> vector<8x384xf32>
    %57 = arith.addf %51, %56 : vector<8x384xf32>
    %c0_30 = arith.constant 0 : index
    %c0_31 = arith.constant 0 : index
    %58 = vector.load %arg8[%c0_30, %c0_31] : memref<8x384xf32, #tpu.memory_space<vmem>>, vector<8x384xf32>
    %59 = arith.addf %58, %57 : vector<8x384xf32>
    %c0_32 = arith.constant 0 : index
    %c0_33 = arith.constant 0 : index
    %60 = vector.load %arg8[%c0_32, %c0_33] : memref<8x384xf32, #tpu.memory_space<vmem>>, vector<8x384xf32>
    tpu.vector_store %arg8[%c0_32, %c0_33], %59 {strides = array<i32>} : memref<8x384xf32, #tpu.memory_space<vmem>>, vector<8x384xf32>,
    %c0_i32_34 = arith.constant 0 : i32
    %61 = arith.cmpi eq, %arg2, %c0_i32_34 : i32
    %62 = arith.extui %61 : i1 to i32
    %c0_i32_35 = arith.constant 0 : i32
    %63 = arith.cmpi ne, %62, %c0_i32_35 : i32
    scf.if %63 {
      %c0_36 = arith.constant 0 : index
      %c0_37 = arith.constant 0 : index
      %64 = vector.load %arg8[%c0_36, %c0_37] : memref<8x384xf32, #tpu.memory_space<vmem>>, vector<8x384xf32>
      %c0_38 = arith.constant 0 : index
      %c0_39 = arith.constant 0 : index
      %65 = vector.load %arg5[%c0_38, %c0_39] : memref<8x1xf32, #tpu.memory_space<vmem>>, vector<8x1xf32>
      %66 = vector.broadcast %65 : vector<8x1xf32> to vector<8x384xf32>
      %67 = arith.addf %64, %66 : vector<8x384xf32>
      %cst_40 = arith.constant 0.000000e+00 : f32
      %68 = vector.broadcast %cst_40 : f32 to vector<8x384xf32>
      %69 = arith.maximumf %67, %68 : vector<8x384xf32>
      %c0_41 = arith.constant 0 : index
      %c0_42 = arith.constant 0 : index
      %70 = vector.load %arg6[%c0_41, %c0_42] : memref<1x384xf32, #tpu.memory_space<vmem>>, vector<1x384xf32>
      %71 = vector.broadcast %70 : vector<1x384xf32> to vector<8x384xf32>
      %72 = arith.mulf %69, %71 : vector<8x384xf32>
      %73 = arith.truncf %72 : vector<8x384xf32> to vector<8x384xbf16>
      %c0_43 = arith.constant 0 : index
      %c0_44 = arith.constant 0 : index
      %c0_45 = arith.constant 0 : index
      %74 = vector.load %arg7[%c0_43, %c0_44, %c0_45] : memref<1x8x384xbf16, #tpu.memory_space<vmem>>, vector<1x8x384xbf16>
      %75 = vector.shape_cast %74 : vector<1x8x384xbf16> to vector<8x384xbf16>
      %76 = vector.shape_cast %73 : vector<8x384xbf16> to vector<1x8x384xbf16>
      tpu.vector_store %arg7[%c0_43, %c0_44, %c0_45], %76 {strides = array<i32>} : memref<1x8x384xbf16, #tpu.memory_space<vmem>>, vector<1x8x384xbf16>,
    } else {
    }
    return
  }
  func.func @transform_0(%arg0: i32, %arg1: i32, %arg2: i32) -> (i32, i32, i32) {
    %c0_i32 = arith.constant 0 : i32
    %c0_i32_0 = arith.constant 0 : i32
    return %arg0, %arg2, %c0_i32 : i32, i32, i32
  }
  func.func @transform_1(%arg0: i32, %arg1: i32, %arg2: i32) -> (i32, i32, i32) {
    %c0_i32 = arith.constant 0 : i32
    %c0_i32_0 = arith.constant 0 : i32
    return %c0_i32, %arg1, %arg2 : i32, i32, i32
  }
  func.func @transform_2(%arg0: i32, %arg1: i32, %arg2: i32) -> (i32, i32) {
    %c0_i32 = arith.constant 0 : i32
    %c0_i32_0 = arith.constant 0 : i32
    return %arg1, %c0_i32 : i32, i32
  }
  func.func @transform_3(%arg0: i32, %arg1: i32, %arg2: i32) -> (i32, i32) {
    %c0_i32 = arith.constant 0 : i32
    %c0_i32_0 = arith.constant 0 : i32
    %c0_i32_1 = arith.constant 0 : i32
    return %c0_i32, %c0_i32_0 : i32, i32
  }
  func.func @transform_4(%arg0: i32, %arg1: i32, %arg2: i32) -> (i32, i32, i32) {
    %c0_i32 = arith.constant 0 : i32
    %c0_i32_0 = arith.constant 0 : i32
    return %arg0, %arg1, %c0_i32 : i32, i32, i32
  }
}

module attributes {stable_mosaic.version = 11 : i64} {
  func.func @kernel(%arg0: i32, %arg1: i32, %arg2: i32, %arg3: memref<1x8x384xbf16, #tpu.memory_space<vmem>>, %arg4: memref<9x8x8xbf16, #tpu.memory_space<vmem>>, %arg5: memref<8x1xf32, #tpu.memory_space<vmem>>, %arg6: memref<1x384xf32, #tpu.memory_space<vmem>>, %arg7: memref<1x8x384xf32, #tpu.memory_space<vmem>>, %arg8: memref<1x8x128xf32, #tpu.memory_space<vmem>>, %arg9: memref<8x384xf32, #tpu.memory_space<vmem>>) attributes {dimension_semantics = [#tpu.dimension_semantics<parallel>, #tpu.dimension_semantics<parallel>, #tpu.dimension_semantics<arbitrary>], iteration_bounds = array<i64: 2, 1, 1>, scalar_prefetch = 0 : i64, scratch_operands = 1 : i64, tpu.core_type = #tpu.core_type<tc>, window_params = [{transform_indices = @transform_0, window_bounds = array<i64: 1, 8, 384>}, {transform_indices = @transform_1, window_bounds = array<i64: 9, 8, 8>}, {transform_indices = @transform_2, window_bounds = array<i64: 8, 1>}, {pipeline_mode = #tpu.pipeline_mode<synchronous>, transform_indices = @transform_3, window_bounds = array<i64: 1, 384>}, {transform_indices = @transform_4, window_bounds = array<i64: 1, 8, 384>}, {transform_indices = @transform_5, window_bounds = array<i64: 1, 8, 128>}]} {
    %c0_i32 = arith.constant 0 : i32
    %0 = arith.cmpi eq, %arg2, %c0_i32 : i32
    %1 = arith.extui %0 : i1 to i32
    %c0_i32_0 = arith.constant 0 : i32
    %2 = arith.cmpi ne, %1, %c0_i32_0 : i32
    scf.if %2 {
      %cst_36 = arith.constant 0.000000e+00 : f32
      %64 = vector.broadcast %cst_36 : f32 to vector<8x384xf32>
      %c0_37 = arith.constant 0 : index
      %c0_38 = arith.constant 0 : index
      %65 = vector.load %arg9[%c0_37, %c0_38] : memref<8x384xf32, #tpu.memory_space<vmem>>, vector<8x384xf32>
      tpu.vector_store %arg9[%c0_37, %c0_38], %64 {strides = array<i32>} : memref<8x384xf32, #tpu.memory_space<vmem>>, vector<8x384xf32>,
    } else {
    }
    %c0 = arith.constant 0 : index
    %c0_1 = arith.constant 0 : index
    %c0_2 = arith.constant 0 : index
    %3 = vector.load %arg3[%c0, %c0_1, %c0_2] : memref<1x8x384xbf16, #tpu.memory_space<vmem>>, vector<1x8x384xbf16>
    %4 = vector.shape_cast %3 : vector<1x8x384xbf16> to vector<8x384xbf16>
    %5 = arith.extf %4 : vector<8x384xbf16> to vector<8x384xf32>
    %c19_i32 = arith.constant 19 : i32
    %6 = tpu.dynamic_rotate %5 by %c19_i32 dim 1 : vector<8x384xf32>, i32 -> vector<8x384xf32>
    %c0_3 = arith.constant 0 : index
    %c0_4 = arith.constant 0 : index
    %c0_5 = arith.constant 0 : index
    %7 = vector.load %arg4[%c0_3, %c0_4, %c0_5] : memref<9x8x8xbf16, #tpu.memory_space<vmem>>, vector<1x8x8xbf16>
    %8 = vector.shape_cast %7 : vector<1x8x8xbf16> to vector<8x8xbf16>
    %9 = arith.truncf %6 : vector<8x384xf32> to vector<8x384xbf16>
    %cst = arith.constant dense<0.000000e+00> : vector<8x384xf32>
    %10 = tpu.matmul %8, %9, %cst {dimension_numbers = #tpu.dot_dimension_numbers<[1], [0], [0], [1], [0, 0, 1, 1], [], []>} : vector<8x8xbf16>, vector<8x384xbf16>, vector<8x384xf32> -> vector<8x384xf32>
    %c18_i32 = arith.constant 18 : i32
    %11 = tpu.dynamic_rotate %5 by %c18_i32 dim 1 : vector<8x384xf32>, i32 -> vector<8x384xf32>
    %c1 = arith.constant 1 : index
    %c0_6 = arith.constant 0 : index
    %c0_7 = arith.constant 0 : index
    %12 = vector.load %arg4[%c1, %c0_6, %c0_7] : memref<9x8x8xbf16, #tpu.memory_space<vmem>>, vector<1x8x8xbf16>
    %13 = vector.shape_cast %12 : vector<1x8x8xbf16> to vector<8x8xbf16>
    %14 = arith.truncf %11 : vector<8x384xf32> to vector<8x384xbf16>
    %cst_8 = arith.constant dense<0.000000e+00> : vector<8x384xf32>
    %15 = tpu.matmul %13, %14, %cst_8 {dimension_numbers = #tpu.dot_dimension_numbers<[1], [0], [0], [1], [0, 0, 1, 1], [], []>} : vector<8x8xbf16>, vector<8x384xbf16>, vector<8x384xf32> -> vector<8x384xf32>
    %16 = arith.addf %10, %15 : vector<8x384xf32>
    %c17_i32 = arith.constant 17 : i32
    %17 = tpu.dynamic_rotate %5 by %c17_i32 dim 1 : vector<8x384xf32>, i32 -> vector<8x384xf32>
    %c2 = arith.constant 2 : index
    %c0_9 = arith.constant 0 : index
    %c0_10 = arith.constant 0 : index
    %18 = vector.load %arg4[%c2, %c0_9, %c0_10] : memref<9x8x8xbf16, #tpu.memory_space<vmem>>, vector<1x8x8xbf16>
    %19 = vector.shape_cast %18 : vector<1x8x8xbf16> to vector<8x8xbf16>
    %20 = arith.truncf %17 : vector<8x384xf32> to vector<8x384xbf16>
    %cst_11 = arith.constant dense<0.000000e+00> : vector<8x384xf32>
    %21 = tpu.matmul %19, %20, %cst_11 {dimension_numbers = #tpu.dot_dimension_numbers<[1], [0], [0], [1], [0, 0, 1, 1], [], []>} : vector<8x8xbf16>, vector<8x384xbf16>, vector<8x384xf32> -> vector<8x384xf32>
    %22 = arith.addf %16, %21 : vector<8x384xf32>
    %c1_i32 = arith.constant 1 : i32
    %23 = tpu.dynamic_rotate %5 by %c1_i32 dim 1 : vector<8x384xf32>, i32 -> vector<8x384xf32>
    %c3 = arith.constant 3 : index
    %c0_12 = arith.constant 0 : index
    %c0_13 = arith.constant 0 : index
    %24 = vector.load %arg4[%c3, %c0_12, %c0_13] : memref<9x8x8xbf16, #tpu.memory_space<vmem>>, vector<1x8x8xbf16>
    %25 = vector.shape_cast %24 : vector<1x8x8xbf16> to vector<8x8xbf16>
    %26 = arith.truncf %23 : vector<8x384xf32> to vector<8x384xbf16>
    %cst_14 = arith.constant dense<0.000000e+00> : vector<8x384xf32>
    %27 = tpu.matmul %25, %26, %cst_14 {dimension_numbers = #tpu.dot_dimension_numbers<[1], [0], [0], [1], [0, 0, 1, 1], [], []>} : vector<8x8xbf16>, vector<8x384xbf16>, vector<8x384xf32> -> vector<8x384xf32>
    %28 = arith.addf %22, %27 : vector<8x384xf32>
    %c4 = arith.constant 4 : index
    %c0_15 = arith.constant 0 : index
    %c0_16 = arith.constant 0 : index
    %29 = vector.load %arg4[%c4, %c0_15, %c0_16] : memref<9x8x8xbf16, #tpu.memory_space<vmem>>, vector<1x8x8xbf16>
    %30 = vector.shape_cast %29 : vector<1x8x8xbf16> to vector<8x8xbf16>
    %31 = arith.truncf %5 : vector<8x384xf32> to vector<8x384xbf16>
    %cst_17 = arith.constant dense<0.000000e+00> : vector<8x384xf32>
    %32 = tpu.matmul %30, %31, %cst_17 {dimension_numbers = #tpu.dot_dimension_numbers<[1], [0], [0], [1], [0, 0, 1, 1], [], []>} : vector<8x8xbf16>, vector<8x384xbf16>, vector<8x384xf32> -> vector<8x384xf32>
    %33 = arith.addf %28, %32 : vector<8x384xf32>
    %c383_i32 = arith.constant 383 : i32
    %34 = tpu.dynamic_rotate %5 by %c383_i32 dim 1 : vector<8x384xf32>, i32 -> vector<8x384xf32>
    %c5 = arith.constant 5 : index
    %c0_18 = arith.constant 0 : index
    %c0_19 = arith.constant 0 : index
    %35 = vector.load %arg4[%c5, %c0_18, %c0_19] : memref<9x8x8xbf16, #tpu.memory_space<vmem>>, vector<1x8x8xbf16>
    %36 = vector.shape_cast %35 : vector<1x8x8xbf16> to vector<8x8xbf16>
    %37 = arith.truncf %34 : vector<8x384xf32> to vector<8x384xbf16>
    %cst_20 = arith.constant dense<0.000000e+00> : vector<8x384xf32>
    %38 = tpu.matmul %36, %37, %cst_20 {dimension_numbers = #tpu.dot_dimension_numbers<[1], [0], [0], [1], [0, 0, 1, 1], [], []>} : vector<8x8xbf16>, vector<8x384xbf16>, vector<8x384xf32> -> vector<8x384xf32>
    %39 = arith.addf %33, %38 : vector<8x384xf32>
    %c367_i32 = arith.constant 367 : i32
    %40 = tpu.dynamic_rotate %5 by %c367_i32 dim 1 : vector<8x384xf32>, i32 -> vector<8x384xf32>
    %c6 = arith.constant 6 : index
    %c0_21 = arith.constant 0 : index
    %c0_22 = arith.constant 0 : index
    %41 = vector.load %arg4[%c6, %c0_21, %c0_22] : memref<9x8x8xbf16, #tpu.memory_space<vmem>>, vector<1x8x8xbf16>
    %42 = vector.shape_cast %41 : vector<1x8x8xbf16> to vector<8x8xbf16>
    %43 = arith.truncf %40 : vector<8x384xf32> to vector<8x384xbf16>
    %cst_23 = arith.constant dense<0.000000e+00> : vector<8x384xf32>
    %44 = tpu.matmul %42, %43, %cst_23 {dimension_numbers = #tpu.dot_dimension_numbers<[1], [0], [0], [1], [0, 0, 1, 1], [], []>} : vector<8x8xbf16>, vector<8x384xbf16>, vector<8x384xf32> -> vector<8x384xf32>
    %45 = arith.addf %39, %44 : vector<8x384xf32>
    %c366_i32 = arith.constant 366 : i32
    %46 = tpu.dynamic_rotate %5 by %c366_i32 dim 1 : vector<8x384xf32>, i32 -> vector<8x384xf32>
    %c7 = arith.constant 7 : index
    %c0_24 = arith.constant 0 : index
    %c0_25 = arith.constant 0 : index
    %47 = vector.load %arg4[%c7, %c0_24, %c0_25] : memref<9x8x8xbf16, #tpu.memory_space<vmem>>, vector<1x8x8xbf16>
    %48 = vector.shape_cast %47 : vector<1x8x8xbf16> to vector<8x8xbf16>
    %49 = arith.truncf %46 : vector<8x384xf32> to vector<8x384xbf16>
    %cst_26 = arith.constant dense<0.000000e+00> : vector<8x384xf32>
    %50 = tpu.matmul %48, %49, %cst_26 {dimension_numbers = #tpu.dot_dimension_numbers<[1], [0], [0], [1], [0, 0, 1, 1], [], []>} : vector<8x8xbf16>, vector<8x384xbf16>, vector<8x384xf32> -> vector<8x384xf32>
    %51 = arith.addf %45, %50 : vector<8x384xf32>
    %c365_i32 = arith.constant 365 : i32
    %52 = tpu.dynamic_rotate %5 by %c365_i32 dim 1 : vector<8x384xf32>, i32 -> vector<8x384xf32>
    %c8 = arith.constant 8 : index
    %c0_27 = arith.constant 0 : index
    %c0_28 = arith.constant 0 : index
    %53 = vector.load %arg4[%c8, %c0_27, %c0_28] : memref<9x8x8xbf16, #tpu.memory_space<vmem>>, vector<1x8x8xbf16>
    %54 = vector.shape_cast %53 : vector<1x8x8xbf16> to vector<8x8xbf16>
    %55 = arith.truncf %52 : vector<8x384xf32> to vector<8x384xbf16>
    %cst_29 = arith.constant dense<0.000000e+00> : vector<8x384xf32>
    %56 = tpu.matmul %54, %55, %cst_29 {dimension_numbers = #tpu.dot_dimension_numbers<[1], [0], [0], [1], [0, 0, 1, 1], [], []>} : vector<8x8xbf16>, vector<8x384xbf16>, vector<8x384xf32> -> vector<8x384xf32>
    %57 = arith.addf %51, %56 : vector<8x384xf32>
    %c0_30 = arith.constant 0 : index
    %c0_31 = arith.constant 0 : index
    %58 = vector.load %arg9[%c0_30, %c0_31] : memref<8x384xf32, #tpu.memory_space<vmem>>, vector<8x384xf32>
    %59 = arith.addf %58, %57 : vector<8x384xf32>
    %c0_32 = arith.constant 0 : index
    %c0_33 = arith.constant 0 : index
    %60 = vector.load %arg9[%c0_32, %c0_33] : memref<8x384xf32, #tpu.memory_space<vmem>>, vector<8x384xf32>
    tpu.vector_store %arg9[%c0_32, %c0_33], %59 {strides = array<i32>} : memref<8x384xf32, #tpu.memory_space<vmem>>, vector<8x384xf32>,
    %c0_i32_34 = arith.constant 0 : i32
    %61 = arith.cmpi eq, %arg2, %c0_i32_34 : i32
    %62 = arith.extui %61 : i1 to i32
    %c0_i32_35 = arith.constant 0 : i32
    %63 = arith.cmpi ne, %62, %c0_i32_35 : i32
    scf.if %63 {
      %c0_36 = arith.constant 0 : index
      %c0_37 = arith.constant 0 : index
      %64 = vector.load %arg9[%c0_36, %c0_37] : memref<8x384xf32, #tpu.memory_space<vmem>>, vector<8x384xf32>
      %c0_38 = arith.constant 0 : index
      %c0_39 = arith.constant 0 : index
      %65 = vector.load %arg5[%c0_38, %c0_39] : memref<8x1xf32, #tpu.memory_space<vmem>>, vector<8x1xf32>
      %66 = vector.broadcast %65 : vector<8x1xf32> to vector<8x384xf32>
      %67 = arith.addf %64, %66 : vector<8x384xf32>
      %cst_40 = arith.constant 0.000000e+00 : f32
      %68 = vector.broadcast %cst_40 : f32 to vector<8x384xf32>
      %69 = arith.maximumf %67, %68 : vector<8x384xf32>
      %c0_41 = arith.constant 0 : index
      %c0_42 = arith.constant 0 : index
      %70 = vector.load %arg6[%c0_41, %c0_42] : memref<1x384xf32, #tpu.memory_space<vmem>>, vector<1x384xf32>
      %71 = vector.broadcast %70 : vector<1x384xf32> to vector<8x384xf32>
      %72 = arith.mulf %69, %71 : vector<8x384xf32>
      %c0_43 = arith.constant 0 : index
      %c0_44 = arith.constant 0 : index
      %c0_45 = arith.constant 0 : index
      %73 = vector.load %arg7[%c0_43, %c0_44, %c0_45] : memref<1x8x384xf32, #tpu.memory_space<vmem>>, vector<1x8x384xf32>
      %74 = vector.shape_cast %73 : vector<1x8x384xf32> to vector<8x384xf32>
      %75 = vector.shape_cast %72 : vector<8x384xf32> to vector<1x8x384xf32>
      tpu.vector_store %arg7[%c0_43, %c0_44, %c0_45], %75 {strides = array<i32>} : memref<1x8x384xf32, #tpu.memory_space<vmem>>, vector<1x8x384xf32>,
      %c0_46 = arith.constant 0 : index
      %c0_47 = arith.constant 0 : index
      %c19 = arith.constant 19 : index
      %76 = vector.load %arg7[%c0_46, %c0_47, %c19] : memref<1x8x384xf32, #tpu.memory_space<vmem>>, vector<1x8x16xf32>
      %77 = vector.shape_cast %76 : vector<1x8x16xf32> to vector<8x16xf32>
      %c0_48 = arith.constant 0 : index
      %c0_49 = arith.constant 0 : index
      %c37 = arith.constant 37 : index
      %78 = vector.load %arg7[%c0_48, %c0_49, %c37] : memref<1x8x384xf32, #tpu.memory_space<vmem>>, vector<1x8x16xf32>
      %79 = vector.shape_cast %78 : vector<1x8x16xf32> to vector<8x16xf32>
      %80 = arith.maximumf %77, %79 : vector<8x16xf32>
      %c0_50 = arith.constant 0 : index
      %c0_51 = arith.constant 0 : index
      %c0_52 = arith.constant 0 : index
      %81 = vector.load %arg8[%c0_50, %c0_51, %c0_52] : memref<1x8x128xf32, #tpu.memory_space<vmem>>, vector<1x8x16xf32>
      %82 = vector.shape_cast %81 : vector<1x8x16xf32> to vector<8x16xf32>
      %83 = vector.shape_cast %80 : vector<8x16xf32> to vector<1x8x16xf32>
      tpu.vector_store %arg8[%c0_50, %c0_51, %c0_52], %83 {strides = array<i32>} : memref<1x8x128xf32, #tpu.memory_space<vmem>>, vector<1x8x16xf32>,
      %c0_53 = arith.constant 0 : index
      %c0_54 = arith.constant 0 : index
      %c55 = arith.constant 55 : index
      %84 = vector.load %arg7[%c0_53, %c0_54, %c55] : memref<1x8x384xf32, #tpu.memory_space<vmem>>, vector<1x8x16xf32>
      %85 = vector.shape_cast %84 : vector<1x8x16xf32> to vector<8x16xf32>
      %c0_55 = arith.constant 0 : index
      %c0_56 = arith.constant 0 : index
      %c73 = arith.constant 73 : index
      %86 = vector.load %arg7[%c0_55, %c0_56, %c73] : memref<1x8x384xf32, #tpu.memory_space<vmem>>, vector<1x8x16xf32>
      %87 = vector.shape_cast %86 : vector<1x8x16xf32> to vector<8x16xf32>
      %88 = arith.maximumf %85, %87 : vector<8x16xf32>
      %c0_57 = arith.constant 0 : index
      %c0_58 = arith.constant 0 : index
      %c16 = arith.constant 16 : index
      %89 = vector.load %arg8[%c0_57, %c0_58, %c16] : memref<1x8x128xf32, #tpu.memory_space<vmem>>, vector<1x8x16xf32>
      %90 = vector.shape_cast %89 : vector<1x8x16xf32> to vector<8x16xf32>
      %91 = vector.shape_cast %88 : vector<8x16xf32> to vector<1x8x16xf32>
      tpu.vector_store %arg8[%c0_57, %c0_58, %c16], %91 {strides = array<i32>} : memref<1x8x128xf32, #tpu.memory_space<vmem>>, vector<1x8x16xf32>,
      %c0_59 = arith.constant 0 : index
      %c0_60 = arith.constant 0 : index
      %c91 = arith.constant 91 : index
      %92 = vector.load %arg7[%c0_59, %c0_60, %c91] : memref<1x8x384xf32, #tpu.memory_space<vmem>>, vector<1x8x16xf32>
      %93 = vector.shape_cast %92 : vector<1x8x16xf32> to vector<8x16xf32>
      %c0_61 = arith.constant 0 : index
      %c0_62 = arith.constant 0 : index
      %c109 = arith.constant 109 : index
      %94 = vector.load %arg7[%c0_61, %c0_62, %c109] : memref<1x8x384xf32, #tpu.memory_space<vmem>>, vector<1x8x16xf32>
      %95 = vector.shape_cast %94 : vector<1x8x16xf32> to vector<8x16xf32>
      %96 = arith.maximumf %93, %95 : vector<8x16xf32>
      %c0_63 = arith.constant 0 : index
      %c0_64 = arith.constant 0 : index
      %c32 = arith.constant 32 : index
      %97 = vector.load %arg8[%c0_63, %c0_64, %c32] : memref<1x8x128xf32, #tpu.memory_space<vmem>>, vector<1x8x16xf32>
      %98 = vector.shape_cast %97 : vector<1x8x16xf32> to vector<8x16xf32>
      %99 = vector.shape_cast %96 : vector<8x16xf32> to vector<1x8x16xf32>
      tpu.vector_store %arg8[%c0_63, %c0_64, %c32], %99 {strides = array<i32>} : memref<1x8x128xf32, #tpu.memory_space<vmem>>, vector<1x8x16xf32>,
      %c0_65 = arith.constant 0 : index
      %c0_66 = arith.constant 0 : index
      %c127 = arith.constant 127 : index
      %100 = vector.load %arg7[%c0_65, %c0_66, %c127] : memref<1x8x384xf32, #tpu.memory_space<vmem>>, vector<1x8x16xf32>
      %101 = vector.shape_cast %100 : vector<1x8x16xf32> to vector<8x16xf32>
      %c0_67 = arith.constant 0 : index
      %c0_68 = arith.constant 0 : index
      %c145 = arith.constant 145 : index
      %102 = vector.load %arg7[%c0_67, %c0_68, %c145] : memref<1x8x384xf32, #tpu.memory_space<vmem>>, vector<1x8x16xf32>
      %103 = vector.shape_cast %102 : vector<1x8x16xf32> to vector<8x16xf32>
      %104 = arith.maximumf %101, %103 : vector<8x16xf32>
      %c0_69 = arith.constant 0 : index
      %c0_70 = arith.constant 0 : index
      %c48 = arith.constant 48 : index
      %105 = vector.load %arg8[%c0_69, %c0_70, %c48] : memref<1x8x128xf32, #tpu.memory_space<vmem>>, vector<1x8x16xf32>
      %106 = vector.shape_cast %105 : vector<1x8x16xf32> to vector<8x16xf32>
      %107 = vector.shape_cast %104 : vector<8x16xf32> to vector<1x8x16xf32>
      tpu.vector_store %arg8[%c0_69, %c0_70, %c48], %107 {strides = array<i32>} : memref<1x8x128xf32, #tpu.memory_space<vmem>>, vector<1x8x16xf32>,
      %c0_71 = arith.constant 0 : index
      %c0_72 = arith.constant 0 : index
      %c163 = arith.constant 163 : index
      %108 = vector.load %arg7[%c0_71, %c0_72, %c163] : memref<1x8x384xf32, #tpu.memory_space<vmem>>, vector<1x8x16xf32>
      %109 = vector.shape_cast %108 : vector<1x8x16xf32> to vector<8x16xf32>
      %c0_73 = arith.constant 0 : index
      %c0_74 = arith.constant 0 : index
      %c181 = arith.constant 181 : index
      %110 = vector.load %arg7[%c0_73, %c0_74, %c181] : memref<1x8x384xf32, #tpu.memory_space<vmem>>, vector<1x8x16xf32>
      %111 = vector.shape_cast %110 : vector<1x8x16xf32> to vector<8x16xf32>
      %112 = arith.maximumf %109, %111 : vector<8x16xf32>
      %c0_75 = arith.constant 0 : index
      %c0_76 = arith.constant 0 : index
      %c64 = arith.constant 64 : index
      %113 = vector.load %arg8[%c0_75, %c0_76, %c64] : memref<1x8x128xf32, #tpu.memory_space<vmem>>, vector<1x8x16xf32>
      %114 = vector.shape_cast %113 : vector<1x8x16xf32> to vector<8x16xf32>
      %115 = vector.shape_cast %112 : vector<8x16xf32> to vector<1x8x16xf32>
      tpu.vector_store %arg8[%c0_75, %c0_76, %c64], %115 {strides = array<i32>} : memref<1x8x128xf32, #tpu.memory_space<vmem>>, vector<1x8x16xf32>,
      %c0_77 = arith.constant 0 : index
      %c0_78 = arith.constant 0 : index
      %c199 = arith.constant 199 : index
      %116 = vector.load %arg7[%c0_77, %c0_78, %c199] : memref<1x8x384xf32, #tpu.memory_space<vmem>>, vector<1x8x16xf32>
      %117 = vector.shape_cast %116 : vector<1x8x16xf32> to vector<8x16xf32>
      %c0_79 = arith.constant 0 : index
      %c0_80 = arith.constant 0 : index
      %c217 = arith.constant 217 : index
      %118 = vector.load %arg7[%c0_79, %c0_80, %c217] : memref<1x8x384xf32, #tpu.memory_space<vmem>>, vector<1x8x16xf32>
      %119 = vector.shape_cast %118 : vector<1x8x16xf32> to vector<8x16xf32>
      %120 = arith.maximumf %117, %119 : vector<8x16xf32>
      %c0_81 = arith.constant 0 : index
      %c0_82 = arith.constant 0 : index
      %c80 = arith.constant 80 : index
      %121 = vector.load %arg8[%c0_81, %c0_82, %c80] : memref<1x8x128xf32, #tpu.memory_space<vmem>>, vector<1x8x16xf32>
      %122 = vector.shape_cast %121 : vector<1x8x16xf32> to vector<8x16xf32>
      %123 = vector.shape_cast %120 : vector<8x16xf32> to vector<1x8x16xf32>
      tpu.vector_store %arg8[%c0_81, %c0_82, %c80], %123 {strides = array<i32>} : memref<1x8x128xf32, #tpu.memory_space<vmem>>, vector<1x8x16xf32>,
      %c0_83 = arith.constant 0 : index
      %c0_84 = arith.constant 0 : index
      %c235 = arith.constant 235 : index
      %124 = vector.load %arg7[%c0_83, %c0_84, %c235] : memref<1x8x384xf32, #tpu.memory_space<vmem>>, vector<1x8x16xf32>
      %125 = vector.shape_cast %124 : vector<1x8x16xf32> to vector<8x16xf32>
      %c0_85 = arith.constant 0 : index
      %c0_86 = arith.constant 0 : index
      %c253 = arith.constant 253 : index
      %126 = vector.load %arg7[%c0_85, %c0_86, %c253] : memref<1x8x384xf32, #tpu.memory_space<vmem>>, vector<1x8x16xf32>
      %127 = vector.shape_cast %126 : vector<1x8x16xf32> to vector<8x16xf32>
      %128 = arith.maximumf %125, %127 : vector<8x16xf32>
      %c0_87 = arith.constant 0 : index
      %c0_88 = arith.constant 0 : index
      %c96 = arith.constant 96 : index
      %129 = vector.load %arg8[%c0_87, %c0_88, %c96] : memref<1x8x128xf32, #tpu.memory_space<vmem>>, vector<1x8x16xf32>
      %130 = vector.shape_cast %129 : vector<1x8x16xf32> to vector<8x16xf32>
      %131 = vector.shape_cast %128 : vector<8x16xf32> to vector<1x8x16xf32>
      tpu.vector_store %arg8[%c0_87, %c0_88, %c96], %131 {strides = array<i32>} : memref<1x8x128xf32, #tpu.memory_space<vmem>>, vector<1x8x16xf32>,
      %c0_89 = arith.constant 0 : index
      %c0_90 = arith.constant 0 : index
      %c271 = arith.constant 271 : index
      %132 = vector.load %arg7[%c0_89, %c0_90, %c271] : memref<1x8x384xf32, #tpu.memory_space<vmem>>, vector<1x8x16xf32>
      %133 = vector.shape_cast %132 : vector<1x8x16xf32> to vector<8x16xf32>
      %c0_91 = arith.constant 0 : index
      %c0_92 = arith.constant 0 : index
      %c289 = arith.constant 289 : index
      %134 = vector.load %arg7[%c0_91, %c0_92, %c289] : memref<1x8x384xf32, #tpu.memory_space<vmem>>, vector<1x8x16xf32>
      %135 = vector.shape_cast %134 : vector<1x8x16xf32> to vector<8x16xf32>
      %136 = arith.maximumf %133, %135 : vector<8x16xf32>
      %c0_93 = arith.constant 0 : index
      %c0_94 = arith.constant 0 : index
      %c112 = arith.constant 112 : index
      %137 = vector.load %arg8[%c0_93, %c0_94, %c112] : memref<1x8x128xf32, #tpu.memory_space<vmem>>, vector<1x8x16xf32>
      %138 = vector.shape_cast %137 : vector<1x8x16xf32> to vector<8x16xf32>
      %139 = vector.shape_cast %136 : vector<8x16xf32> to vector<1x8x16xf32>
      tpu.vector_store %arg8[%c0_93, %c0_94, %c112], %139 {strides = array<i32>} : memref<1x8x128xf32, #tpu.memory_space<vmem>>, vector<1x8x16xf32>,
    } else {
    }
    return
  }
  func.func @transform_0(%arg0: i32, %arg1: i32, %arg2: i32) -> (i32, i32, i32) {
    %c0_i32 = arith.constant 0 : i32
    %c0_i32_0 = arith.constant 0 : i32
    return %arg0, %arg2, %c0_i32 : i32, i32, i32
  }
  func.func @transform_1(%arg0: i32, %arg1: i32, %arg2: i32) -> (i32, i32, i32) {
    %c0_i32 = arith.constant 0 : i32
    %c0_i32_0 = arith.constant 0 : i32
    return %c0_i32, %arg1, %arg2 : i32, i32, i32
  }
  func.func @transform_2(%arg0: i32, %arg1: i32, %arg2: i32) -> (i32, i32) {
    %c0_i32 = arith.constant 0 : i32
    %c0_i32_0 = arith.constant 0 : i32
    return %arg1, %c0_i32 : i32, i32
  }
  func.func @transform_3(%arg0: i32, %arg1: i32, %arg2: i32) -> (i32, i32) {
    %c0_i32 = arith.constant 0 : i32
    %c0_i32_0 = arith.constant 0 : i32
    %c0_i32_1 = arith.constant 0 : i32
    return %c0_i32, %c0_i32_0 : i32, i32
  }
  func.func @transform_4(%arg0: i32, %arg1: i32, %arg2: i32) -> (i32, i32, i32) {
    %c0_i32 = arith.constant 0 : i32
    %c0_i32_0 = arith.constant 0 : i32
    return %arg0, %arg1, %c0_i32 : i32, i32, i32
  }
  func.func @transform_5(%arg0: i32, %arg1: i32, %arg2: i32) -> (i32, i32, i32) {
    %c0_i32 = arith.constant 0 : i32
    %c0_i32_0 = arith.constant 0 : i32
    return %arg0, %arg1, %c0_i32 : i32, i32, i32
  }
}

</mosaic_0001>

<bundles_post_ra>
// kernel: encoder_forward.2
= control target key start
LH: loop header
LB: loop body
LE: loop exit
PB: predicated region body
PF: predicated region fallthrough
CT: control target
= control target key end

     0   :  { %s1746_s15 = smov 0   ;;  %s1748_s16 = smov 0   ;;  %s1944_s0 = inlined_call_operand.vmem [shape: bf16[2,8,384], index: 0, kind: input, shape index: {}]   ;;  %s1945_s1 = inlined_call_operand.vmem [shape: bf16[9,8,8], index: 1, kind: input, shape index: {}]   ;;  %s1946_s2 = inlined_call_operand.vmem [shape: f32[8,1], index: 2, kind: input, shape index: {}]   ;;  %s1947_s3 = inlined_call_operand.vmem [shape: f32[1,384], index: 3, kind: input, shape index: {}]   ;;  %s1948_s4 = inlined_call_operand.vmem [shape: bf16[2,8,384], index: 4, kind: output, shape index: {}]  }
   0x1   :  { %s1750_s17 = smov 0  }
   0x2 LB: > { %s33_s18 = sadd.s32 1, %s1704_s16  ;;  %p1487_p0 = scmp.ge.s32.totalorder %s1708_s17, 1  ;;  %s1708_s17 = sphi %s1750_s17, %s14_s17   ;;  %s1704_s16 = sphi %s1748_s16, %s1950_s16   ;;  %s1700_s15 = sphi %s1746_s15, %s1949_s15  }
   0x3   : > { %p35_p1 = scmp.ge.s32.totalorder %s33_s18, 2  ;;  %p212_p2 = scmp.lt.s32.totalorder %s1708_s17, 3 }
   0x5   : > { %s1952_s18 = smov (%p35_p1, %s33_s18), 0  ;;  %p213_p3 = pnand %p1487_p0, %p212_p2 }
   0x6   : > { %p257_p4 = scmp.lt.s32.totalorder (!%p213_p3), %s1700_s15, 1  ;;  %v1710_v0 = vmov (!%p213_p3), 0.0   ;;  %v1711_v5 = vmov (!%p213_p3), 0   ;;  %vm1712_vm0 = vmmov (!%p213_p3), 0   ;;  %s1713_s23 = smov (!%p213_p3), 18   ;;  %v1305_v8 = vld [vmem:[%s1946_s2] sm:$0xff] (!%p213_p3)  ;;  %v305_v9 = vlaneseq (!%p213_p3) }
   0x7   : > { %216 = sbr.rel (%p213_p3) target bundleno = 437 (0x1b5), region = 36  ;;  %1552 = vmatprep.subr.bf16.mxu1 (!%p213_p3), %v1710_v0  ;;  %376 = vmatprep.mubr.bf16.mxu0 (!%p213_p3), %v1711_v5  ;;  %s1714_s24 = smov (!%p213_p3), 19   ;;  %vm334_vm3 = vcmask (!%p213_p3), 1043456   ;;  %v1490_v35 = vld [vmem:[%s1945_s1 + $0x4] sm:$0xf] (!%p213_p3)  ;;  %vm330_vm5 = vcmask (!%p213_p3), 64512  }
   0x8   : > { %1682 = vset.pattern.permute.xlu0 (!%p213_p3), %v1711_v5  ;;  %1554 = vmatprep.mubr.msk.bf16.mxu1 (!%p213_p3), %vm1712_vm0, %v1710_v0  ;;  %s1715_s25 = smov (!%p213_p3), 17   ;;  %s1716_s26 = smov (!%p213_p3), 1   ;;  %v1788_v10 = vand.u32 (!%p213_p3), 127, %v305_v9  ;;  %v311_v51 = vld [vmem:[%s1945_s1] sm:$0xf] (!%p213_p3) }
   0x9   : > { %s1717_s27 = smov (!%p213_p3), 127   ;;  %s1718_s28 = smov (!%p213_p3), 111   ;;  %v1497_v59 = vld [vmem:[%s1945_s1 + $0x8] sm:$0xf] (!%p213_p3) }
   0xa   : > { %s1719_s29 = smov (!%p213_p3), 110   ;;  %s1720_s30 = smov (!%p213_p3), 109   ;;  %vm321_vm1 = vcmp.lt.s32.totalorder (!%p213_p3), %v1788_v10, 18  ;;  %vm307_vm2 = vcmp.lt.s32.totalorder (!%p213_p3), %v1788_v10, 19  ;;  %vm524_vm4 = vcmp.lt.s32.totalorder (!%p213_p3), %v1788_v10, 17  ;;  %vm635_vm6 = vcmp.lt.s32.totalorder (!%p213_p3), %v1788_v10, 1 }
   0xb   : > { %vm852_vm7 = vcmp.lt.s32.totalorder (!%p213_p3), %v1788_v10, 127  ;;  %vm963_vm8 = vcmp.lt.s32.totalorder (!%p213_p3), %v1788_v10, 111  ;;  %vm1074_vm9 = vcmp.lt.s32.totalorder (!%p213_p3), %v1788_v10, 110  ;;  %vm1185_vm10 = vcmp.lt.s32.totalorder (!%p213_p3), %v1788_v10, 109 }
   0xe   : > { %s1954_s15 = smov (!%p257_p4, %s1700_s15), 1 }
   0xf   : > { %s1606_s19 = smul.u32 12, %s1954_s15 }
  0x11   : > { %s265_s22 = scalar_lea.vmem %s1944_s0, %s1606_s19  ;;  %s285_s8 = scalar_lea.vmem %s1948_s4, %s1606_s19 }
  0x12   : > { %v1773_v1 = vld [vmem:[%s265_s22] sm:$0xff]  ;;  %v1777_v4 = vld [vmem:[%s265_s22 + $0x8] sm:$0xf] }
  0x13   : > { %v296_v2 = vunpack.c.l.bf16 %v1773_v1  ;;  %v297_v3 = vunpack.c.h.bf16 %v1773_v1  ;;  %v298_v7 = vunpack.c.l.bf16 %v1777_v4  ;;  %v1507_v63 = vcombine.high %v1773_v1, %v1773_v1 }
  0x15   : > { %v1642_v6 = vpack.i.bf16 %v297_v3, %v296_v2 }
  0x17   : > { %1643 = vrot.lane.b32.xlu0 %v1642_v6, %s1713_s23  ;;  %1648 = vrot.lane.b32.xlu1 %v1642_v6, %s1714_s24 }
  0x1b   : > { %319 = vrot.lane.b32.xlu0 %v298_v7, %s1713_s23  ;;  %303 = vrot.lane.b32.xlu1 %v298_v7, %s1714_s24 }
  0x1f   : > { %1653 = vrot.lane.b32.xlu0 %v1642_v6, %s1715_s25  ;;  %522 = vrot.lane.b32.xlu1 %v298_v7, %s1715_s25 }
  0x23   : > { %1658 = vrot.lane.b32.xlu0 %v1642_v6, %s1716_s26  ;;  %633 = vrot.lane.b32.xlu1 %v298_v7, %s1716_s26 }
  0x27   : > { %1663 = vrot.lane.b32.xlu0 %v1642_v6, %s1717_s27  ;;  %850 = vrot.lane.b32.xlu1 %v298_v7, %s1717_s27 }
  0x2b   : > { %1668 = vrot.lane.b32.xlu0 %v1642_v6, %s1718_s28  ;;  %961 = vrot.lane.b32.xlu1 %v298_v7, %s1718_s28 }
  0x2f   : > { %1673 = vrot.lane.b32.xlu0 %v1642_v6, %s1719_s29  ;;  %1072 = vrot.lane.b32.xlu1 %v298_v7, %s1719_s29 }
  0x33   : > { %1678 = vrot.lane.b32.xlu0 %v1642_v6, %s1720_s30  ;;  %1183 = vrot.lane.b32.xlu1 %v298_v7, %s1720_s30  ;;  %v1506_v6 = vcombine.low %v1773_v1, %v1773_v1  ;;  %v1508_v7 = vcombine.low %v1777_v4, %v1777_v4 }
  0x35   : > { %v760_v1 = vsel %vm334_vm3, %v1508_v7, 0 }
  0x37   : > { %1308 = vperm.xlu0 %1682, %v1305_v8  }
  0x89   : > { %v1644_v11 = vpop.permute.xlu0 %1643  ;;  %v1649_v12 = vpop.permute.xlu1 %1648 }
  0x8a   : > { %v1646_v13 = vunpack.i.h.bf16 %v1644_v11  ;;  %v1645_v14 = vunpack.i.l.bf16 %v1644_v11  ;;  %v1651_v15 = vunpack.i.h.bf16 %v1649_v12  ;;  %v1650_v16 = vunpack.i.l.bf16 %v1649_v12  ;;  %v1501_v12 = vld [vmem:[%s1945_s1 + $0xc] sm:$0xf] }
  0x8c   : > { %v309_v17 = vsel %vm307_vm2, %v1650_v16, %v1651_v15  ;;  %v323_v18 = vsel %vm321_vm1, %v1645_v14, %v1646_v13 }
  0x8d   : > { %v320_v19 = vpop.permute.xlu0 %319  ;;  %v304_v20 = vpop.permute.xlu1 %303  ;;  %v313_v21 = vpack.c.bf16 %v309_v17, %v309_v17  ;;  %v328_v22 = vpack.c.bf16 %v323_v18, %v323_v18 }
  0x8e   : > { %v322_v23 = vsel %vm321_vm1, %v1646_v13, %v320_v19  ;;  %v324_v24 = vsel %vm321_vm1, %v320_v19, %v1645_v14  ;;  %v308_v25 = vsel %vm307_vm2, %v1651_v15, %v304_v20  ;;  %v310_v26 = vsel %vm307_vm2, %v304_v20, %v1650_v16 }
  0x8f   : > { %v327_v27 = vpack.c.bf16 %v324_v24, %v324_v24  ;;  %v329_v28 = vpack.c.bf16 %v322_v23, %v322_v23  ;;  %v312_v29 = vpack.c.bf16 %v310_v26, %v310_v26  ;;  %v314_v30 = vpack.c.bf16 %v308_v25, %v308_v25  ;;  %1491 = vmatprep.subr.msk.bf16.mxu0 %vm334_vm3, %v328_v22  ;;  %v1505_v23 = vld [vmem:[%s1945_s1 + $0x10] sm:$0xf] }
  0x90   : > { %v754_v14 = vsel %vm334_vm3, %v1506_v6, 0 }
  0x91   : > { %v336_v31 = vsel %vm334_vm3, %v327_v27, 0  ;;  %v342_v32 = vsel %vm334_vm3, %v329_v28, 0  ;;  %v1654_v33 = vpop.permute.xlu0 %1653  ;;  %v523_v34 = vpop.permute.xlu1 %522  ;;  %v429_v38 = vsel %vm334_vm3, %v312_v29, 0  ;;  %v435_v39 = vsel %vm334_vm3, %v314_v30, 0 }
  0x92   : > { %345 = vmatpush1.bf16.msra.mxu0 %v336_v31  ;;  %1553 = vmatpush3.bf16.msra.mxu1 %v342_v32  ;;  %v1656_v36 = vunpack.i.h.bf16 %v1654_v33  ;;  %v1655_v37 = vunpack.i.l.bf16 %v1654_v33 }
  0x93   : > { %1494 = vmatprep.subr.msk.bf16.mxu0 %vm334_vm3, %v313_v21  ;;  %1558 = vmatprep.subr.bf16.mxu1 %v1710_v0 }
  0x94   : > { %v525_v40 = vsel %vm524_vm4, %v1656_v36, %v523_v34  ;;  %v526_v41 = vsel %vm524_vm4, %v1655_v37, %v1656_v36  ;;  %v527_v42 = vsel %vm524_vm4, %v523_v34, %v1655_v37  ;;  %v1512_v36 = vld [vmem:[%s1945_s1 + $0x14] sm:$0xf] }
  0x95   : > { %1492 = vmatmul.mubr.msk.bf16.vlgmr.msra.gmra.mrb[0].mxu0 %vm330_vm5, %v1490_v35  ;;  %1555 = vmatmul.mubr.msk.bf16.vlgmr.msra.gmra.mrb[0].mxu1 %vm330_vm5, %v1490_v35  ;;  %v531_v43 = vpack.c.bf16 %v526_v41, %v526_v41  ;;  %v1659_v44 = vpop.permute.xlu0 %1658  ;;  %v530_v47 = vpack.c.bf16 %v527_v42, %v527_v42  ;;  %v532_v48 = vpack.c.bf16 %v525_v40, %v525_v40  ;;  %v634_v49 = vpop.permute.xlu1 %633 }
  0x96   : > { %438 = vmatpush1.bf16.msra.mxu0 %v429_v38  ;;  %1559 = vmatpush3.bf16.msra.mxu1 %v435_v39  ;;  %v1661_v45 = vunpack.i.h.bf16 %v1659_v44  ;;  %v1660_v46 = vunpack.i.l.bf16 %v1659_v44 }
  0x97   : > { %469 = vmatprep.mubr.bf16.mxu0 %v1711_v5  ;;  %1560 = vmatprep.mubr.msk.bf16.mxu1 %vm1712_vm0, %v1710_v0  ;;  %v537_v52 = vsel %vm334_vm3, %v530_v47, 0  ;;  %v543_v53 = vsel %vm334_vm3, %v532_v48, 0 }
  0x98   : > { %1498 = vmatprep.subr.msk.bf16.mxu0 %vm334_vm3, %v531_v43  ;;  %1564 = vmatprep.subr.bf16.mxu1 %v1710_v0  ;;  %v637_v50 = vsel %vm635_vm6, %v1660_v46, %v1661_v45  ;;  %v636_v54 = vsel %vm635_vm6, %v1661_v45, %v634_v49  ;;  %v638_v55 = vsel %vm635_vm6, %v634_v49, %v1660_v46  ;;  %v1516_v49 = vld [vmem:[%s1945_s1 + $0x18] sm:$0xf] }
  0x99   : > { %v642_v56 = vpack.c.bf16 %v637_v50, %v637_v50  ;;  %v641_v57 = vpack.c.bf16 %v638_v55, %v638_v55  ;;  %v643_v58 = vpack.c.bf16 %v636_v54, %v636_v54  ;;  %v1664_v60 = vpop.permute.xlu0 %1663  ;;  %v851_v3 = vpop.permute.xlu1 %850 }
  0x9a   : > { %v1666_v2 = vunpack.i.h.bf16 %v1664_v60  ;;  %v1665_v8 = vunpack.i.l.bf16 %v1664_v60 }
  0x9b   : > { %v648_v61 = vsel %vm334_vm3, %v641_v57, 0  ;;  %v654_v62 = vsel %vm334_vm3, %v643_v58, 0 }
  0x9c   : > { %v853_v11 = vsel %vm852_vm7, %v1666_v2, %v851_v3  ;;  %v855_v4 = vsel %vm852_vm7, %v851_v3, %v1665_v8  ;;  %v854_v16 = vsel %vm852_vm7, %v1665_v8, %v1666_v2 }
  0x9d   : > { %1495 = vmatmul.mubr.msk.bf16.vlgmr.msra.gmra.mrb[4].mxu0 %vm330_vm5, %v311_v51  ;;  %1561 = vmatmul.mubr.msk.bf16.vlgmr.msra.gmra.mrb[4].mxu1 %vm330_vm5, %v311_v51  ;;  %v1669_v13 = vpop.permute.xlu0 %1668  ;;  %v859_v15 = vpack.c.bf16 %v853_v11, %v853_v11  ;;  %v962_v18 = vpop.permute.xlu1 %961  ;;  %v860_v19 = vpack.c.bf16 %v855_v4, %v855_v4  ;;  %v858_v20 = vpack.c.bf16 %v854_v16, %v854_v16 }
  0x9e   : > { %546 = vmatpush1.bf16.msra.mxu0 %v537_v52  ;;  %1565 = vmatpush3.bf16.msra.mxu1 %v543_v53  ;;  %v1671_v17 = vunpack.i.h.bf16 %v1669_v13  ;;  %v1670_v21 = vunpack.i.l.bf16 %v1669_v13 }
  0x9f   : > { %577 = vmatprep.mubr.bf16.mxu0 %v1711_v5  ;;  %1566 = vmatprep.mubr.msk.bf16.mxu1 %vm1712_vm0, %v1710_v0  ;;  %v865_v25 = vsel %vm334_vm3, %v858_v20, 0  ;;  %v871_v26 = vsel %vm334_vm3, %v860_v19, 0 }
  0xa0   : > { %1502 = vmatprep.subr.msk.bf16.mxu0 %vm334_vm3, %v642_v56  ;;  %1570 = vmatprep.subr.bf16.mxu1 %v1710_v0  ;;  %v964_v22 = vsel %vm963_vm8, %v1671_v17, %v962_v18  ;;  %v966_v27 = vsel %vm963_vm8, %v962_v18, %v1670_v21  ;;  %v965_v29 = vsel %vm963_vm8, %v1670_v21, %v1671_v17  ;;  %v1520_v56 = vld [vmem:[%s1945_s1 + $0x1c] sm:$0xf] }
  0xa1   : > { %v1674_v24 = vpop.permute.xlu0 %1673  ;;  %v970_v28 = vpack.c.bf16 %v964_v22, %v964_v22  ;;  %v1073_v31 = vpop.permute.xlu1 %1072  ;;  %v971_v32 = vpack.c.bf16 %v966_v27, %v966_v27  ;;  %v969_v33 = vpack.c.bf16 %v965_v29, %v965_v29 }
  0xa2   : > { %v1676_v30 = vunpack.i.h.bf16 %v1674_v24  ;;  %v1675_v34 = vunpack.i.l.bf16 %v1674_v24 }
  0xa3   : > { %v976_v38 = vsel %vm334_vm3, %v969_v33, 0  ;;  %v982_v39 = vsel %vm334_vm3, %v971_v32, 0 }
  0xa4   : > { %v1075_v35 = vsel %vm1074_vm9, %v1676_v30, %v1073_v31  ;;  %v1077_v40 = vsel %vm1074_vm9, %v1073_v31, %v1675_v34  ;;  %v1076_v42 = vsel %vm1074_vm9, %v1675_v34, %v1676_v30 }
  0xa5   : > { %1499 = vmatmul.mubr.msk.bf16.vlgmr.msra.gmra.mrb[8].mxu0 %vm330_vm5, %v1497_v59  ;;  %1567 = vmatmul.mubr.msk.bf16.vlgmr.msra.gmra.mrb[8].mxu1 %vm330_vm5, %v1497_v59  ;;  %v1679_v37 = vpop.permute.xlu0 %1678  ;;  %v1081_v41 = vpack.c.bf16 %v1075_v35, %v1075_v35  ;;  %v1184_v44 = vpop.permute.xlu1 %1183  ;;  %v1082_v45 = vpack.c.bf16 %v1077_v40, %v1077_v40  ;;  %v1080_v46 = vpack.c.bf16 %v1076_v42, %v1076_v42  ;;  %v1524_v59 = vld [vmem:[%s1945_s1 + $0x20] sm:$0xf] }
  0xa6   : > { %657 = vmatpush1.bf16.msra.mxu0 %v648_v61  ;;  %1571 = vmatpush3.bf16.msra.mxu1 %v654_v62  ;;  %v1681_v43 = vunpack.i.h.bf16 %v1679_v37  ;;  %v1680_v47 = vunpack.i.l.bf16 %v1679_v37 }
  0xa7   : > { %688 = vmatprep.mubr.bf16.mxu0 %v1711_v5  ;;  %1572 = vmatprep.mubr.msk.bf16.mxu1 %vm1712_vm0, %v1710_v0  ;;  %v1087_v10 = vsel %vm334_vm3, %v1080_v46, 0  ;;  %v1093_v50 = vsel %vm334_vm3, %v1082_v45, 0 }
  0xa8   : > { %1509 = vmatprep.subr.msk.bf16.mxu0 %vm334_vm3, %v1507_v63  ;;  %1576 = vmatprep.subr.bf16.mxu1 %v1710_v0  ;;  %v1186_v48 = vsel %vm1185_vm10, %v1681_v43, %v1184_v44  ;;  %v1188_v51 = vsel %vm1185_vm10, %v1184_v44, %v1680_v47  ;;  %v1187_v53 = vsel %vm1185_vm10, %v1680_v47, %v1681_v43 }
  0xa9   : > { %v1192_v52 = vpack.c.bf16 %v1186_v48, %v1186_v48  ;;  %v1193_v54 = vpack.c.bf16 %v1188_v51, %v1188_v51  ;;  %v1191_v55 = vpack.c.bf16 %v1187_v53, %v1187_v53 }
  0xab   : > { %v1198_v57 = vsel %vm334_vm3, %v1191_v55, 0  ;;  %v1204_v58 = vsel %vm334_vm3, %v1193_v54, 0 }
  0xad   : > { %1503 = vmatmul.mubr.msk.bf16.vlgmr.msra.gmra.mrb[12].mxu0 %vm330_vm5, %v1501_v12  ;;  %1573 = vmatmul.mubr.msk.bf16.vlgmr.msra.gmra.mrb[12].mxu1 %vm330_vm5, %v1501_v12 }
  0xae   : > { %763 = vmatpush1.bf16.msra.mxu0 %v754_v14  ;;  %1577 = vmatpush3.bf16.msra.mxu1 %v760_v1 }
  0xaf   : > { %794 = vmatprep.mubr.bf16.mxu0 %v1711_v5  ;;  %1578 = vmatprep.mubr.msk.bf16.mxu1 %vm1712_vm0, %v1710_v0 }
  0xb0   : > { %1513 = vmatprep.subr.msk.bf16.mxu0 %vm334_vm3, %v859_v15  ;;  %1582 = vmatprep.subr.bf16.mxu1 %v1710_v0 }
  0xb5   : > { %1510 = vmatmul.mubr.msk.bf16.vlgmr.msra.gmra.mrb[16].mxu0 %vm330_vm5, %v1505_v23  ;;  %1579 = vmatmul.mubr.msk.bf16.vlgmr.msra.gmra.mrb[16].mxu1 %vm330_vm5, %v1505_v23 }
  0xb6   : > { %874 = vmatpush1.bf16.msra.mxu0 %v865_v25  ;;  %1583 = vmatpush3.bf16.msra.mxu1 %v871_v26 }
  0xb7   : > { %905 = vmatprep.mubr.bf16.mxu0 %v1711_v5  ;;  %1584 = vmatprep.mubr.msk.bf16.mxu1 %vm1712_vm0, %v1710_v0 }
  0xb8   : > { %1517 = vmatprep.subr.msk.bf16.mxu0 %vm334_vm3, %v970_v28  ;;  %1588 = vmatprep.subr.bf16.mxu1 %v1710_v0 }
  0xbd   : > { %1514 = vmatmul.mubr.msk.bf16.vlgmr.msra.gmra.mrb[20].mxu0 %vm330_vm5, %v1512_v36  ;;  %1585 = vmatmul.mubr.msk.bf16.vlgmr.msra.gmra.mrb[20].mxu1 %vm330_vm5, %v1512_v36 }
  0xbe   : > { %985 = vmatpush1.bf16.msra.mxu0 %v976_v38  ;;  %1589 = vmatpush3.bf16.msra.mxu1 %v982_v39 }
  0xbf   : > { %1016 = vmatprep.mubr.bf16.mxu0 %v1711_v5  ;;  %1590 = vmatprep.mubr.msk.bf16.mxu1 %vm1712_vm0, %v1710_v0 }
  0xc0   : > { %1521 = vmatprep.subr.msk.bf16.mxu0 %vm334_vm3, %v1081_v41  ;;  %1594 = vmatprep.subr.bf16.mxu1 %v1710_v0 }
  0xc5   : > { %1518 = vmatmul.mubr.msk.bf16.vlgmr.msra.gmra.mrb[24].mxu0 %vm330_vm5, %v1516_v49  ;;  %1591 = vmatmul.mubr.msk.bf16.vlgmr.msra.gmra.mrb[24].mxu1 %vm330_vm5, %v1516_v49 }
  0xc6   : > { %1096 = vmatpush1.bf16.msra.mxu0 %v1087_v10  ;;  %1595 = vmatpush3.bf16.msra.mxu1 %v1093_v50 }
  0xc7   : > { %1127 = vmatprep.mubr.bf16.mxu0 %v1711_v5  ;;  %1596 = vmatprep.mubr.msk.bf16.mxu1 %vm1712_vm0, %v1710_v0 }
  0xc8   : > { %1525 = vmatprep.subr.msk.bf16.mxu0 %vm334_vm3, %v1192_v52  ;;  %1600 = vmatprep.subr.bf16.mxu1 %v1710_v0 }
  0xcd   : > { %1522 = vmatmul.mubr.msk.bf16.vlgmr.msra.gmra.mrb[28].mxu0 %vm330_vm5, %v1520_v56  ;;  %1597 = vmatmul.mubr.msk.bf16.vlgmr.msra.gmra.mrb[28].mxu1 %vm330_vm5, %v1520_v56 }
  0xce   : > { %1207 = vmatpush1.bf16.msra.mxu0 %v1198_v57  ;;  %1601 = vmatpush3.bf16.msra.mxu1 %v1204_v58 }
  0xcf   : > { %1238 = vmatprep.mubr.bf16.mxu0 %v1711_v5  ;;  %1602 = vmatprep.mubr.msk.bf16.mxu1 %vm1712_vm0, %v1710_v0 }
  0xd5   : > { %1526 = vmatmul.mubr.msk.bf16.vlgmr.msra.gmra.mrb[32].mxu0 %vm330_vm5, %v1524_v59  ;;  %1603 = vmatmul.mubr.msk.bf16.vlgmr.msra.gmra.mrb[32].mxu1 %vm330_vm5, %v1524_v59 }
 0x168   : > { %v378_v60 = vpop.f32.mrb[0].mxu0  ;;  %v419_v61 = vpop.f32.mrb[0].mxu1 }
 0x169   : > { %v380_v62 = vpop.f32.mrb[1].mxu0  ;;  %v1556_v63 = vpop.f32.mrb[1].mxu1 }
 0x16a   : > { %v382_v2 = vpop.f32.mrb[2].mxu0  ;;  %v422_v3 = vpop.f32.mrb[2].mxu1 }
 0x16b   : > { %v383_v6 = vpop.f32.mrb[3].mxu0  ;;  %v1557_v7 = vpop.f32.mrb[3].mxu1 }
 0x170   : > { %v471_v5 = vpop.f32.mrb[4].mxu0  ;;  %v512_v8 = vpop.f32.mrb[4].mxu1 }
 0x171   : > { %v472_v11 = vadd.f32 %v471_v5, %v378_v60  ;;  %v513_v0 = vadd.f32 %v512_v8, %v419_v61  ;;  %v473_v12 = vpop.f32.mrb[5].mxu0  ;;  %v1562_v13 = vpop.f32.mrb[5].mxu1 }
 0x172   : > { %v474_v14 = vadd.f32 %v473_v12, %v380_v62  ;;  %v475_v1 = vpop.f32.mrb[6].mxu0  ;;  %v515_v4 = vpop.f32.mrb[6].mxu1 }
 0x173   : > { %v476_v15 = vpop.f32.mrb[7].mxu0  ;;  %v1563_v16 = vpop.f32.mrb[7].mxu1 }
 0x178   : > { %v579_v17 = vpop.f32.mrb[8].mxu0  ;;  %v620_v18 = vpop.f32.mrb[8].mxu1 }
 0x179   : > { %v626_v19 = vadd.f32 %v579_v17, %v472_v11  ;;  %v628_v20 = vadd.f32 %v620_v18, %v513_v0  ;;  %v581_v21 = vpop.f32.mrb[9].mxu0  ;;  %v1568_v22 = vpop.f32.mrb[9].mxu1 }
 0x17a   : > { %v627_v23 = vadd.f32 %v581_v21, %v474_v14  ;;  %v583_v24 = vpop.f32.mrb[10].mxu0  ;;  %v623_v25 = vpop.f32.mrb[10].mxu1 }
 0x17b   : > { %v584_v26 = vpop.f32.mrb[11].mxu0  ;;  %v1569_v27 = vpop.f32.mrb[11].mxu1 }
 0x17c   : > { %v1317_v26 = vld [vmem:[%s1947_s3] sm:$0x7] }
 0x180   : > { %v690_v28 = vpop.f32.mrb[12].mxu0  ;;  %v731_v29 = vpop.f32.mrb[12].mxu1 }
 0x181   : > { %v737_v30 = vadd.f32 %v690_v28, %v626_v19  ;;  %v739_v31 = vadd.f32 %v731_v29, %v628_v20  ;;  %v692_v32 = vpop.f32.mrb[13].mxu0  ;;  %v1574_v33 = vpop.f32.mrb[13].mxu1  ;;  %v1320_v20 = vshrl.u32 %v305_v9, 7 }
 0x182   : > { %v738_v34 = vadd.f32 %v692_v32, %v627_v23  ;;  %v694_v35 = vpop.f32.mrb[14].mxu0  ;;  %v734_v36 = vpop.f32.mrb[14].mxu1 }
 0x183   : > { %v695_v37 = vpop.f32.mrb[15].mxu0  ;;  %v1575_v38 = vpop.f32.mrb[15].mxu1  ;;  %v1321_v21 = vsub.s32 0, %v1320_v20  ;;  %v1329_v22 = vsub.s32 2, %v1320_v20  ;;  %v1325_v27 = vsub.s32 1, %v1320_v20 }
 0x184   : > { %v1309_v23 = vpop.permute.xlu0 %1308 }
 0x185   : > { %v1322_v35 = vrot.slane %v1317_v26, %v1321_v21  ;;  %v1330_v9 = vrot.slane %v1317_v26, %v1329_v22 }
 0x188   : > { %v796_v39 = vpop.f32.mrb[16].mxu0  ;;  %v837_v40 = vpop.f32.mrb[16].mxu1 }
 0x189   : > { %v843_v41 = vadd.f32 %v796_v39, %v737_v30  ;;  %v845_v42 = vadd.f32 %v837_v40, %v739_v31  ;;  %v798_v43 = vpop.f32.mrb[17].mxu0  ;;  %v1580_v44 = vpop.f32.mrb[17].mxu1  ;;  %v1326_v40 = vrot.slane %v1317_v26, %v1325_v27 }
 0x18a   : > { %v844_v45 = vadd.f32 %v798_v43, %v738_v34  ;;  %v800_v46 = vpop.f32.mrb[18].mxu0  ;;  %v840_v47 = vpop.f32.mrb[18].mxu1 }
 0x18b   : > { %v801_v48 = vpop.f32.mrb[19].mxu0  ;;  %v1581_v49 = vpop.f32.mrb[19].mxu1 }
 0x190   : > { %v907_v10 = vpop.f32.mrb[20].mxu0  ;;  %v948_v50 = vpop.f32.mrb[20].mxu1 }
 0x191   : > { %v954_v51 = vadd.f32 %v907_v10, %v843_v41  ;;  %v956_v52 = vadd.f32 %v948_v50, %v845_v42  ;;  %v909_v53 = vpop.f32.mrb[21].mxu0  ;;  %v1586_v54 = vpop.f32.mrb[21].mxu1 }
 0x192   : > { %v955_v55 = vadd.f32 %v909_v53, %v844_v45  ;;  %v911_v56 = vpop.f32.mrb[22].mxu0  ;;  %v951_v57 = vpop.f32.mrb[22].mxu1 }
 0x193   : > { %v912_v58 = vpop.f32.mrb[23].mxu0  ;;  %v1587_v59 = vpop.f32.mrb[23].mxu1 }
 0x198   : > { %v1018_v60 = vpop.f32.mrb[24].mxu0  ;;  %v1059_v61 = vpop.f32.mrb[24].mxu1 }
 0x199   : > { %v1065_v62 = vadd.f32 %v1018_v60, %v954_v51  ;;  %v1067_v63 = vadd.f32 %v1059_v61, %v956_v52  ;;  %v1020_v2 = vpop.f32.mrb[25].mxu0  ;;  %v1592_v3 = vpop.f32.mrb[25].mxu1 }
 0x19a   : > { %v1066_v6 = vadd.f32 %v1020_v2, %v955_v55  ;;  %v1022_v7 = vpop.f32.mrb[26].mxu0  ;;  %v1062_v5 = vpop.f32.mrb[26].mxu1 }
 0x19b   : > { %v1023_v8 = vpop.f32.mrb[27].mxu0  ;;  %v1593_v11 = vpop.f32.mrb[27].mxu1 }
 0x1a0   : > { %v1129_v0 = vpop.f32.mrb[28].mxu0  ;;  %v1170_v12 = vpop.f32.mrb[28].mxu1 }
 0x1a1   : > { %v1176_v13 = vadd.f32 %v1129_v0, %v1065_v62  ;;  %v1178_v14 = vadd.f32 %v1170_v12, %v1067_v63  ;;  %v1131_v1 = vpop.f32.mrb[29].mxu0  ;;  %v1598_v4 = vpop.f32.mrb[29].mxu1 }
 0x1a2   : > { %v1177_v15 = vadd.f32 %v1131_v1, %v1066_v6  ;;  %v1133_v16 = vpop.f32.mrb[30].mxu0  ;;  %v1173_v17 = vpop.f32.mrb[30].mxu1 }
 0x1a3   : > { %v1134_v18 = vpop.f32.mrb[31].mxu0  ;;  %v1599_v19 = vpop.f32.mrb[31].mxu1 }
 0x1a8   : > { %v1240_v24 = vpop.f32.mrb[32].mxu0  ;;  %v1281_v25 = vpop.f32.mrb[32].mxu1 }
 0x1a9   : > { %v1287_v28 = vadd.f32 %v1240_v24, %v1176_v13  ;;  %v1289_v29 = vadd.f32 %v1281_v25, %v1178_v14  ;;  %v1242_v30 = vpop.f32.mrb[33].mxu0  ;;  %v1604_v31 = vpop.f32.mrb[33].mxu1 }
 0x1aa   : > { %v1288_v32 = vadd.f32 %v1242_v30, %v1177_v15  ;;  %v1244_v33 = vpop.f32.mrb[34].mxu0  ;;  %v1284_v34 = vpop.f32.mrb[34].mxu1 }
 0x1ab   : > { %v1311_v36 = vadd.f32 %v1309_v23, %v1287_v28  ;;  %v1313_v37 = vadd.f32 %v1309_v23, %v1289_v29  ;;  %v1245_v38 = vpop.f32.mrb[35].mxu0  ;;  %v1605_v39 = vpop.f32.mrb[35].mxu1 }
 0x1ac   : > { %v1312_v41 = vadd.f32 %v1309_v23, %v1288_v32 }
 0x1ad   : > { %v1314_v42 = vmax.f32 %v1311_v36, 0.0  ;;  %v1316_v43 = vmax.f32 %v1313_v37, 0.0 }
 0x1ae   : > { %v1315_v44 = vmax.f32 %v1312_v41, 0.0 }
 0x1af   : > { %v1334_v45 = vmul.f32 %v1322_v35, %v1314_v42  ;;  %v1336_v46 = vmul.f32 %v1330_v9, %v1316_v43 }
 0x1b0   : > { %v1335_v47 = vmul.f32 %v1326_v40, %v1315_v44 }
 0x1b1   : > { %v1533_v48 = vpack.c.bf16 %v1336_v46, %v1336_v46 }
 0x1b2   : > { %v1532_v49 = vpack.c.bf16 %v1335_v47, %v1334_v45 }
 0x1b3   : > { %1351 = vst [vmem:[%s285_s8 + $0x8] sm:$0xf] %v1533_v48 }
 0x1b4   : > { %1350 = vst [vmem:[%s285_s8] sm:$0xff] %v1532_v49 }
 0x1b5 PF: > { %s14_s17 = sadd.s32 1, %s1708_s17   ;;  %s1949_s15 = smov %s1704_s16 }
 0x1b6   : > { %p11_p5 = scmp.ge.s32.totalorder %s14_s17, 4   ;;  %s1950_s16 = smov %s1952_s18 }
 0x1b8   :  { %13 = sbr.rel (!%p11_p5) target bundleno = 2 (0x2), region = 88 }

// kernel: encoder_forward.3
= control target key start
LH: loop header
LB: loop body
LE: loop exit
PB: predicated region body
PF: predicated region fallthrough
CT: control target
= control target key end

     0   :  { %s1948_s18 = smov 0   ;;  %s1950_s19 = smov 0   ;;  %s2161_s0 = inlined_call_operand.vmem [shape: bf16[2,8,384], index: 0, kind: input, shape index: {}]   ;;  %s2162_s1 = inlined_call_operand.vmem [shape: bf16[9,8,8], index: 1, kind: input, shape index: {}]   ;;  %s2163_s2 = inlined_call_operand.vmem [shape: f32[8,1], index: 2, kind: input, shape index: {}]   ;;  %s2164_s3 = inlined_call_operand.vmem [shape: f32[1,384], index: 3, kind: input, shape index: {}]   ;;  %s2165_s4 = inlined_call_operand.vmem [shape: f32[2,8,384], index: 4, kind: output, shape index: {0}]   ;;  %s2166_s5 = inlined_call_operand.vmem [shape: f32[2,8,128], index: 5, kind: output, shape index: {1}]  }
   0x1   :  { %s1952_s20 = smov 0  }
   0x2 LB: > { %s35_s21 = sadd.s32 1, %s1894_s19  ;;  %p1672_p0 = scmp.ge.s32.totalorder %s1898_s20, 1  ;;  %s1898_s20 = sphi %s1952_s20, %s16_s20   ;;  %s1894_s19 = sphi %s1950_s19, %s2168_s19   ;;  %s1890_s18 = sphi %s1948_s18, %s2167_s18  }
   0x3   : > { %p37_p1 = scmp.ge.s32.totalorder %s35_s21, 2  ;;  %p242_p2 = scmp.lt.s32.totalorder %s1898_s20, 3 }
   0x5   : > { %s2170_s21 = smov (%p37_p1, %s35_s21), 0  ;;  %p243_p3 = pnand %p1672_p0, %p242_p2 }
   0x6   : > { %p296_p4 = scmp.lt.s32.totalorder (!%p243_p3), %s1890_s18, 1  ;;  %v1900_v0 = vmov (!%p243_p3), 0.0   ;;  %v1901_v5 = vmov (!%p243_p3), 0   ;;  %vm1902_vm0 = vmmov (!%p243_p3), 0   ;;  %s1903_s26 = smov (!%p243_p3), 18   ;;  %v1351_v8 = vld [vmem:[%s2163_s2] sm:$0xff] (!%p243_p3)  ;;  %v351_v9 = vlaneseq (!%p243_p3) }
   0x7   : > { %246 = sbr.rel (%p243_p3) target bundleno = 684 (0x2ac), region = 36  ;;  %1734 = vmatprep.subr.bf16.mxu1 (!%p243_p3), %v1900_v0  ;;  %422 = vmatprep.mubr.bf16.mxu0 (!%p243_p3), %v1901_v5  ;;  %s1904_s27 = smov (!%p243_p3), 19   ;;  %vm380_vm3 = vcmask (!%p243_p3), 1043456   ;;  %v1676_v35 = vld [vmem:[%s2162_s1 + $0x4] sm:$0xf] (!%p243_p3)  ;;  %vm376_vm5 = vcmask (!%p243_p3), 64512  }
   0x8   : > { %1872 = vset.pattern.permute.xlu0 (!%p243_p3), %v1901_v5  ;;  %1736 = vmatprep.mubr.msk.bf16.mxu1 (!%p243_p3), %vm1902_vm0, %v1900_v0  ;;  %s1905_s28 = smov (!%p243_p3), 17   ;;  %s1906_s29 = smov (!%p243_p3), 1   ;;  %v1992_v10 = vand.u32 (!%p243_p3), 127, %v351_v9  ;;  %v357_v51 = vld [vmem:[%s2162_s1] sm:$0xf] (!%p243_p3)  ;;  %vm1474_vm11 = vcmask (!%p243_p3), 900096  }
   0x9   : > { %s1907_s30 = smov (!%p243_p3), 127   ;;  %s1908_s6 = smov (!%p243_p3), 111   ;;  %v1683_v59 = vld [vmem:[%s2162_s1 + $0x8] sm:$0xf] (!%p243_p3)  ;;  %vm1396_vm12 = vcmask (!%p243_p3), 130048   ;;  %vm1408_vm13 = vcmask (!%p243_p3), 261248  }
   0xa   : > { %s1909_s7 = smov (!%p243_p3), 110   ;;  %s1910_s8 = smov (!%p243_p3), 109   ;;  %vm367_vm1 = vcmp.lt.s32.totalorder (!%p243_p3), %v1992_v10, 18  ;;  %vm353_vm2 = vcmp.lt.s32.totalorder (!%p243_p3), %v1992_v10, 19  ;;  %vm570_vm4 = vcmp.lt.s32.totalorder (!%p243_p3), %v1992_v10, 17  ;;  %vm681_vm6 = vcmp.lt.s32.totalorder (!%p243_p3), %v1992_v10, 1 }
   0xb   : > { %vm898_vm7 = vcmp.lt.s32.totalorder (!%p243_p3), %v1992_v10, 127  ;;  %vm1009_vm8 = vcmp.lt.s32.totalorder (!%p243_p3), %v1992_v10, 111  ;;  %vm1120_vm9 = vcmp.lt.s32.totalorder (!%p243_p3), %v1992_v10, 110  ;;  %vm1231_vm10 = vcmp.lt.s32.totalorder (!%p243_p3), %v1992_v10, 109  ;;  %s1911_s16 = smov (!%p243_p3), 69   ;;  %s1912_s17 = smov (!%p243_p3), 89  }
   0xc   : > { %s1916_s23 = smov (!%p243_p3), 97   ;;  %s1917_s24 = smov (!%p243_p3), 117   ;;  %vm1420_vm14 = vcmask (!%p243_p3), 392448   ;;  %vm1436_vm15 = vcmask (!%p243_p3), 400384  }
   0xe   : > { %s2172_s18 = smov (!%p296_p4, %s1890_s18), 1 }
   0xf   : > { %s1788_s22 = smul.u32 12, %s2172_s18 }
  0x10   : > { %s1789_s12 = smul.u32 24, %s2172_s18 }
  0x11   : > { %s304_s25 = scalar_lea.vmem %s2161_s0, %s1788_s22  ;;  %s1913_s22 = smov 49  }
  0x12   : > { %v1973_v1 = vld [vmem:[%s304_s25] sm:$0xff]  ;;  %v1977_v4 = vld [vmem:[%s304_s25 + $0x8] sm:$0xf]  ;;  %s324_s15 = scalar_lea.vmem %s2165_s4, %s1789_s12  ;;  %s1675_s25 = sshll.u32 %s2172_s18, 3 }
  0x13   : > { %v342_v2 = vunpack.c.l.bf16 %v1973_v1  ;;  %v343_v3 = vunpack.c.h.bf16 %v1973_v1  ;;  %v344_v7 = vunpack.c.l.bf16 %v1977_v4  ;;  %v1693_v63 = vcombine.high %v1973_v1, %v1973_v1 }
  0x15   : > { %v1832_v6 = vpack.i.bf16 %v343_v3, %v342_v2 }
  0x17   : > { %1833 = vrot.lane.b32.xlu0 %v1832_v6, %s1903_s26  ;;  %1838 = vrot.lane.b32.xlu1 %v1832_v6, %s1904_s27 }
  0x1b   : > { %365 = vrot.lane.b32.xlu0 %v344_v7, %s1903_s26  ;;  %349 = vrot.lane.b32.xlu1 %v344_v7, %s1904_s27 }
  0x1f   : > { %1843 = vrot.lane.b32.xlu0 %v1832_v6, %s1905_s28  ;;  %568 = vrot.lane.b32.xlu1 %v344_v7, %s1905_s28  ;;  %s331_s28 = scalar_lea.vmem %s2166_s5, %s1675_s25 }
  0x23   : > { %1848 = vrot.lane.b32.xlu0 %v1832_v6, %s1906_s29  ;;  %679 = vrot.lane.b32.xlu1 %v344_v7, %s1906_s29 }
  0x27   : > { %1853 = vrot.lane.b32.xlu0 %v1832_v6, %s1907_s30  ;;  %896 = vrot.lane.b32.xlu1 %v344_v7, %s1907_s30 }
  0x2b   : > { %1858 = vrot.lane.b32.xlu0 %v1832_v6, %s1908_s6  ;;  %1007 = vrot.lane.b32.xlu1 %v344_v7, %s1908_s6 }
  0x2f   : > { %1863 = vrot.lane.b32.xlu0 %v1832_v6, %s1909_s7  ;;  %1118 = vrot.lane.b32.xlu1 %v344_v7, %s1909_s7 }
  0x33   : > { %1868 = vrot.lane.b32.xlu0 %v1832_v6, %s1910_s8  ;;  %1229 = vrot.lane.b32.xlu1 %v344_v7, %s1910_s8  ;;  %v1692_v6 = vcombine.low %v1973_v1, %v1973_v1  ;;  %v1694_v7 = vcombine.low %v1977_v4, %v1977_v4 }
  0x35   : > { %v806_v1 = vsel %vm380_vm3, %v1694_v7, 0 }
  0x37   : > { %1354 = vperm.xlu0 %1872, %v1351_v8  }
  0x89   : > { %v1834_v11 = vpop.permute.xlu0 %1833  ;;  %v1839_v12 = vpop.permute.xlu1 %1838 }
  0x8a   : > { %v1836_v13 = vunpack.i.h.bf16 %v1834_v11  ;;  %v1835_v14 = vunpack.i.l.bf16 %v1834_v11  ;;  %v1841_v15 = vunpack.i.h.bf16 %v1839_v12  ;;  %v1840_v16 = vunpack.i.l.bf16 %v1839_v12  ;;  %v1687_v12 = vld [vmem:[%s2162_s1 + $0xc] sm:$0xf] }
  0x8c   : > { %v355_v17 = vsel %vm353_vm2, %v1840_v16, %v1841_v15  ;;  %v369_v18 = vsel %vm367_vm1, %v1835_v14, %v1836_v13 }
  0x8d   : > { %v366_v19 = vpop.permute.xlu0 %365  ;;  %v350_v20 = vpop.permute.xlu1 %349  ;;  %v359_v21 = vpack.c.bf16 %v355_v17, %v355_v17  ;;  %v374_v22 = vpack.c.bf16 %v369_v18, %v369_v18 }
  0x8e   : > { %v368_v23 = vsel %vm367_vm1, %v1836_v13, %v366_v19  ;;  %v370_v24 = vsel %vm367_vm1, %v366_v19, %v1835_v14  ;;  %v354_v25 = vsel %vm353_vm2, %v1841_v15, %v350_v20  ;;  %v356_v26 = vsel %vm353_vm2, %v350_v20, %v1840_v16 }
  0x8f   : > { %v373_v27 = vpack.c.bf16 %v370_v24, %v370_v24  ;;  %v375_v28 = vpack.c.bf16 %v368_v23, %v368_v23  ;;  %v358_v29 = vpack.c.bf16 %v356_v26, %v356_v26  ;;  %v360_v30 = vpack.c.bf16 %v354_v25, %v354_v25  ;;  %1677 = vmatprep.subr.msk.bf16.mxu0 %vm380_vm3, %v374_v22  ;;  %v1691_v23 = vld [vmem:[%s2162_s1 + $0x10] sm:$0xf] }
  0x90   : > { %v800_v14 = vsel %vm380_vm3, %v1692_v6, 0  ;;  %vm1451_vm1 = vcmask 654848   ;;  %vm1463_vm2 = vcmask 786048  }
  0x91   : > { %v382_v31 = vsel %vm380_vm3, %v373_v27, 0  ;;  %v388_v32 = vsel %vm380_vm3, %v375_v28, 0  ;;  %v1844_v33 = vpop.permute.xlu0 %1843  ;;  %v569_v34 = vpop.permute.xlu1 %568  ;;  %v475_v38 = vsel %vm380_vm3, %v358_v29, 0  ;;  %v481_v39 = vsel %vm380_vm3, %v360_v30, 0 }
  0x92   : > { %391 = vmatpush1.bf16.msra.mxu0 %v382_v31  ;;  %1735 = vmatpush3.bf16.msra.mxu1 %v388_v32  ;;  %v1846_v36 = vunpack.i.h.bf16 %v1844_v33  ;;  %v1845_v37 = vunpack.i.l.bf16 %v1844_v33 }
  0x93   : > { %1680 = vmatprep.subr.msk.bf16.mxu0 %vm380_vm3, %v359_v21  ;;  %1740 = vmatprep.subr.bf16.mxu1 %v1900_v0 }
  0x94   : > { %v571_v40 = vsel %vm570_vm4, %v1846_v36, %v569_v34  ;;  %v572_v41 = vsel %vm570_vm4, %v1845_v37, %v1846_v36  ;;  %v573_v42 = vsel %vm570_vm4, %v569_v34, %v1845_v37  ;;  %v1698_v36 = vld [vmem:[%s2162_s1 + $0x14] sm:$0xf]  ;;  %vm1494_vm4 = vcmask 1048448  }
  0x95   : > { %1678 = vmatmul.mubr.msk.bf16.vlgmr.msra.gmra.mrb[0].mxu0 %vm376_vm5, %v1676_v35  ;;  %1737 = vmatmul.mubr.msk.bf16.vlgmr.msra.gmra.mrb[0].mxu1 %vm376_vm5, %v1676_v35  ;;  %v577_v43 = vpack.c.bf16 %v572_v41, %v572_v41  ;;  %v1849_v44 = vpop.permute.xlu0 %1848  ;;  %v576_v47 = vpack.c.bf16 %v573_v42, %v573_v42  ;;  %v578_v48 = vpack.c.bf16 %v571_v40, %v571_v40  ;;  %v680_v49 = vpop.permute.xlu1 %679 }
  0x96   : > { %484 = vmatpush1.bf16.msra.mxu0 %v475_v38  ;;  %1741 = vmatpush3.bf16.msra.mxu1 %v481_v39  ;;  %v1851_v45 = vunpack.i.h.bf16 %v1849_v44  ;;  %v1850_v46 = vunpack.i.l.bf16 %v1849_v44 }
  0x97   : > { %515 = vmatprep.mubr.bf16.mxu0 %v1901_v5  ;;  %1742 = vmatprep.mubr.msk.bf16.mxu1 %vm1902_vm0, %v1900_v0  ;;  %v583_v52 = vsel %vm380_vm3, %v576_v47, 0  ;;  %v589_v53 = vsel %vm380_vm3, %v578_v48, 0 }
  0x98   : > { %1684 = vmatprep.subr.msk.bf16.mxu0 %vm380_vm3, %v577_v43  ;;  %1746 = vmatprep.subr.bf16.mxu1 %v1900_v0  ;;  %v683_v50 = vsel %vm681_vm6, %v1850_v46, %v1851_v45  ;;  %v682_v54 = vsel %vm681_vm6, %v1851_v45, %v680_v49  ;;  %v684_v55 = vsel %vm681_vm6, %v680_v49, %v1850_v46  ;;  %v1702_v49 = vld [vmem:[%s2162_s1 + $0x18] sm:$0xf] }
  0x99   : > { %v688_v56 = vpack.c.bf16 %v683_v50, %v683_v50  ;;  %v687_v57 = vpack.c.bf16 %v684_v55, %v684_v55  ;;  %v689_v58 = vpack.c.bf16 %v682_v54, %v682_v54  ;;  %v1854_v60 = vpop.permute.xlu0 %1853  ;;  %v897_v3 = vpop.permute.xlu1 %896 }
  0x9a   : > { %v1856_v2 = vunpack.i.h.bf16 %v1854_v60  ;;  %v1855_v8 = vunpack.i.l.bf16 %v1854_v60 }
  0x9b   : > { %v694_v61 = vsel %vm380_vm3, %v687_v57, 0  ;;  %v700_v62 = vsel %vm380_vm3, %v689_v58, 0 }
  0x9c   : > { %v899_v11 = vsel %vm898_vm7, %v1856_v2, %v897_v3  ;;  %v901_v4 = vsel %vm898_vm7, %v897_v3, %v1855_v8  ;;  %v900_v16 = vsel %vm898_vm7, %v1855_v8, %v1856_v2 }
  0x9d   : > { %1681 = vmatmul.mubr.msk.bf16.vlgmr.msra.gmra.mrb[4].mxu0 %vm376_vm5, %v357_v51  ;;  %1743 = vmatmul.mubr.msk.bf16.vlgmr.msra.gmra.mrb[4].mxu1 %vm376_vm5, %v357_v51  ;;  %v1859_v13 = vpop.permute.xlu0 %1858  ;;  %v905_v15 = vpack.c.bf16 %v899_v11, %v899_v11  ;;  %v1008_v18 = vpop.permute.xlu1 %1007  ;;  %v906_v19 = vpack.c.bf16 %v901_v4, %v901_v4  ;;  %v904_v20 = vpack.c.bf16 %v900_v16, %v900_v16 }
  0x9e   : > { %592 = vmatpush1.bf16.msra.mxu0 %v583_v52  ;;  %1747 = vmatpush3.bf16.msra.mxu1 %v589_v53  ;;  %v1861_v17 = vunpack.i.h.bf16 %v1859_v13  ;;  %v1860_v21 = vunpack.i.l.bf16 %v1859_v13 }
  0x9f   : > { %623 = vmatprep.mubr.bf16.mxu0 %v1901_v5  ;;  %1748 = vmatprep.mubr.msk.bf16.mxu1 %vm1902_vm0, %v1900_v0  ;;  %v911_v25 = vsel %vm380_vm3, %v904_v20, 0  ;;  %v917_v26 = vsel %vm380_vm3, %v906_v19, 0 }
  0xa0   : > { %1688 = vmatprep.subr.msk.bf16.mxu0 %vm380_vm3, %v688_v56  ;;  %1752 = vmatprep.subr.bf16.mxu1 %v1900_v0  ;;  %v1010_v22 = vsel %vm1009_vm8, %v1861_v17, %v1008_v18  ;;  %v1012_v27 = vsel %vm1009_vm8, %v1008_v18, %v1860_v21  ;;  %v1011_v29 = vsel %vm1009_vm8, %v1860_v21, %v1861_v17  ;;  %v1706_v56 = vld [vmem:[%s2162_s1 + $0x1c] sm:$0xf] }
  0xa1   : > { %v1864_v24 = vpop.permute.xlu0 %1863  ;;  %v1016_v28 = vpack.c.bf16 %v1010_v22, %v1010_v22  ;;  %v1119_v31 = vpop.permute.xlu1 %1118  ;;  %v1017_v32 = vpack.c.bf16 %v1012_v27, %v1012_v27  ;;  %v1015_v33 = vpack.c.bf16 %v1011_v29, %v1011_v29 }
  0xa2   : > { %v1866_v30 = vunpack.i.h.bf16 %v1864_v24  ;;  %v1865_v34 = vunpack.i.l.bf16 %v1864_v24 }
  0xa3   : > { %v1022_v38 = vsel %vm380_vm3, %v1015_v33, 0  ;;  %v1028_v39 = vsel %vm380_vm3, %v1017_v32, 0 }
  0xa4   : > { %v1121_v35 = vsel %vm1120_vm9, %v1866_v30, %v1119_v31  ;;  %v1123_v40 = vsel %vm1120_vm9, %v1119_v31, %v1865_v34  ;;  %v1122_v42 = vsel %vm1120_vm9, %v1865_v34, %v1866_v30 }
  0xa5   : > { %1685 = vmatmul.mubr.msk.bf16.vlgmr.msra.gmra.mrb[8].mxu0 %vm376_vm5, %v1683_v59  ;;  %1749 = vmatmul.mubr.msk.bf16.vlgmr.msra.gmra.mrb[8].mxu1 %vm376_vm5, %v1683_v59  ;;  %v1869_v37 = vpop.permute.xlu0 %1868  ;;  %v1127_v41 = vpack.c.bf16 %v1121_v35, %v1121_v35  ;;  %v1230_v44 = vpop.permute.xlu1 %1229  ;;  %v1128_v45 = vpack.c.bf16 %v1123_v40, %v1123_v40  ;;  %v1126_v46 = vpack.c.bf16 %v1122_v42, %v1122_v42  ;;  %v1710_v59 = vld [vmem:[%s2162_s1 + $0x20] sm:$0xf] }
  0xa6   : > { %703 = vmatpush1.bf16.msra.mxu0 %v694_v61  ;;  %1753 = vmatpush3.bf16.msra.mxu1 %v700_v62  ;;  %v1871_v43 = vunpack.i.h.bf16 %v1869_v37  ;;  %v1870_v47 = vunpack.i.l.bf16 %v1869_v37 }
  0xa7   : > { %734 = vmatprep.mubr.bf16.mxu0 %v1901_v5  ;;  %1754 = vmatprep.mubr.msk.bf16.mxu1 %vm1902_vm0, %v1900_v0  ;;  %v1133_v10 = vsel %vm380_vm3, %v1126_v46, 0  ;;  %v1139_v50 = vsel %vm380_vm3, %v1128_v45, 0 }
  0xa8   : > { %1695 = vmatprep.subr.msk.bf16.mxu0 %vm380_vm3, %v1693_v63  ;;  %1758 = vmatprep.subr.bf16.mxu1 %v1900_v0  ;;  %v1232_v48 = vsel %vm1231_vm10, %v1871_v43, %v1230_v44  ;;  %v1234_v51 = vsel %vm1231_vm10, %v1230_v44, %v1870_v47  ;;  %v1233_v53 = vsel %vm1231_vm10, %v1870_v47, %v1871_v43 }
  0xa9   : > { %v1238_v52 = vpack.c.bf16 %v1232_v48, %v1232_v48  ;;  %v1239_v54 = vpack.c.bf16 %v1234_v51, %v1234_v51  ;;  %v1237_v55 = vpack.c.bf16 %v1233_v53, %v1233_v53 }
  0xab   : > { %v1244_v57 = vsel %vm380_vm3, %v1237_v55, 0  ;;  %v1250_v58 = vsel %vm380_vm3, %v1239_v54, 0 }
  0xad   : > { %1689 = vmatmul.mubr.msk.bf16.vlgmr.msra.gmra.mrb[12].mxu0 %vm376_vm5, %v1687_v12  ;;  %1755 = vmatmul.mubr.msk.bf16.vlgmr.msra.gmra.mrb[12].mxu1 %vm376_vm5, %v1687_v12 }
  0xae   : > { %809 = vmatpush1.bf16.msra.mxu0 %v800_v14  ;;  %1759 = vmatpush3.bf16.msra.mxu1 %v806_v1 }
  0xaf   : > { %840 = vmatprep.mubr.bf16.mxu0 %v1901_v5  ;;  %1760 = vmatprep.mubr.msk.bf16.mxu1 %vm1902_vm0, %v1900_v0 }
  0xb0   : > { %1699 = vmatprep.subr.msk.bf16.mxu0 %vm380_vm3, %v905_v15  ;;  %1764 = vmatprep.subr.bf16.mxu1 %v1900_v0 }
  0xb5   : > { %1696 = vmatmul.mubr.msk.bf16.vlgmr.msra.gmra.mrb[16].mxu0 %vm376_vm5, %v1691_v23  ;;  %1761 = vmatmul.mubr.msk.bf16.vlgmr.msra.gmra.mrb[16].mxu1 %vm376_vm5, %v1691_v23 }
  0xb6   : > { %920 = vmatpush1.bf16.msra.mxu0 %v911_v25  ;;  %1765 = vmatpush3.bf16.msra.mxu1 %v917_v26 }
  0xb7   : > { %951 = vmatprep.mubr.bf16.mxu0 %v1901_v5  ;;  %1766 = vmatprep.mubr.msk.bf16.mxu1 %vm1902_vm0, %v1900_v0 }
  0xb8   : > { %1703 = vmatprep.subr.msk.bf16.mxu0 %vm380_vm3, %v1016_v28  ;;  %1770 = vmatprep.subr.bf16.mxu1 %v1900_v0 }
  0xbd   : > { %1700 = vmatmul.mubr.msk.bf16.vlgmr.msra.gmra.mrb[20].mxu0 %vm376_vm5, %v1698_v36  ;;  %1767 = vmatmul.mubr.msk.bf16.vlgmr.msra.gmra.mrb[20].mxu1 %vm376_vm5, %v1698_v36 }
  0xbe   : > { %1031 = vmatpush1.bf16.msra.mxu0 %v1022_v38  ;;  %1771 = vmatpush3.bf16.msra.mxu1 %v1028_v39 }
  0xbf   : > { %1062 = vmatprep.mubr.bf16.mxu0 %v1901_v5  ;;  %1772 = vmatprep.mubr.msk.bf16.mxu1 %vm1902_vm0, %v1900_v0 }
  0xc0   : > { %1707 = vmatprep.subr.msk.bf16.mxu0 %vm380_vm3, %v1127_v41  ;;  %1776 = vmatprep.subr.bf16.mxu1 %v1900_v0 }
  0xc5   : > { %1704 = vmatmul.mubr.msk.bf16.vlgmr.msra.gmra.mrb[24].mxu0 %vm376_vm5, %v1702_v49  ;;  %1773 = vmatmul.mubr.msk.bf16.vlgmr.msra.gmra.mrb[24].mxu1 %vm376_vm5, %v1702_v49 }
  0xc6   : > { %1142 = vmatpush1.bf16.msra.mxu0 %v1133_v10  ;;  %1777 = vmatpush3.bf16.msra.mxu1 %v1139_v50 }
  0xc7   : > { %1173 = vmatprep.mubr.bf16.mxu0 %v1901_v5  ;;  %1778 = vmatprep.mubr.msk.bf16.mxu1 %vm1902_vm0, %v1900_v0 }
  0xc8   : > { %1711 = vmatprep.subr.msk.bf16.mxu0 %vm380_vm3, %v1238_v52  ;;  %1782 = vmatprep.subr.bf16.mxu1 %v1900_v0  ;;  %vm1482_vm3 = vcmask 917248  }
  0xcd   : > { %1708 = vmatmul.mubr.msk.bf16.vlgmr.msra.gmra.mrb[28].mxu0 %vm376_vm5, %v1706_v56  ;;  %1779 = vmatmul.mubr.msk.bf16.vlgmr.msra.gmra.mrb[28].mxu1 %vm376_vm5, %v1706_v56 }
  0xce   : > { %1253 = vmatpush1.bf16.msra.mxu0 %v1244_v57  ;;  %1783 = vmatpush3.bf16.msra.mxu1 %v1250_v58 }
  0xcf   : > { %1284 = vmatprep.mubr.bf16.mxu0 %v1901_v5  ;;  %1784 = vmatprep.mubr.msk.bf16.mxu1 %vm1902_vm0, %v1900_v0  ;;  %vm1439_vm0 = vcmask 523648  }
  0xd5   : > { %1712 = vmatmul.mubr.msk.bf16.vlgmr.msra.gmra.mrb[32].mxu0 %vm376_vm5, %v1710_v59  ;;  %1785 = vmatmul.mubr.msk.bf16.vlgmr.msra.gmra.mrb[32].mxu1 %vm376_vm5, %v1710_v59 }
 0x168   : > { %v424_v60 = vpop.f32.mrb[0].mxu0  ;;  %v465_v61 = vpop.f32.mrb[0].mxu1 }
 0x169   : > { %v426_v62 = vpop.f32.mrb[1].mxu0  ;;  %v1738_v63 = vpop.f32.mrb[1].mxu1 }
 0x16a   : > { %v428_v2 = vpop.f32.mrb[2].mxu0  ;;  %v468_v3 = vpop.f32.mrb[2].mxu1 }
 0x16b   : > { %v429_v6 = vpop.f32.mrb[3].mxu0  ;;  %v1739_v7 = vpop.f32.mrb[3].mxu1 }
 0x170   : > { %v517_v5 = vpop.f32.mrb[4].mxu0  ;;  %v558_v8 = vpop.f32.mrb[4].mxu1 }
 0x171   : > { %v518_v11 = vadd.f32 %v517_v5, %v424_v60  ;;  %v519_v0 = vpop.f32.mrb[5].mxu0  ;;  %v559_v12 = vadd.f32 %v558_v8, %v465_v61  ;;  %v1744_v13 = vpop.f32.mrb[5].mxu1 }
 0x172   : > { %v520_v14 = vadd.f32 %v519_v0, %v426_v62  ;;  %v521_v1 = vpop.f32.mrb[6].mxu0  ;;  %v561_v4 = vpop.f32.mrb[6].mxu1 }
 0x173   : > { %v522_v15 = vpop.f32.mrb[7].mxu0  ;;  %v1745_v16 = vpop.f32.mrb[7].mxu1 }
 0x178   : > { %v625_v17 = vpop.f32.mrb[8].mxu0  ;;  %v666_v18 = vpop.f32.mrb[8].mxu1 }
 0x179   : > { %v672_v19 = vadd.f32 %v625_v17, %v518_v11  ;;  %v627_v20 = vpop.f32.mrb[9].mxu0  ;;  %v674_v21 = vadd.f32 %v666_v18, %v559_v12  ;;  %v1750_v22 = vpop.f32.mrb[9].mxu1 }
 0x17a   : > { %v673_v23 = vadd.f32 %v627_v20, %v520_v14  ;;  %v629_v24 = vpop.f32.mrb[10].mxu0  ;;  %v669_v25 = vpop.f32.mrb[10].mxu1  ;;  %v1366_v20 = vshrl.u32 %v351_v9, 7 }
 0x17b   : > { %v630_v26 = vpop.f32.mrb[11].mxu0  ;;  %v1751_v27 = vpop.f32.mrb[11].mxu1 }
 0x17c   : > { %v1375_v22 = vsub.s32 2, %v1366_v20  ;;  %v1363_v26 = vld [vmem:[%s2164_s3] sm:$0x7]  ;;  %v1371_v27 = vsub.s32 1, %v1366_v20 }
 0x17e   : > { %v1376_v9 = vrot.slane %v1363_v26, %v1375_v22 }
 0x180   : > { %v736_v28 = vpop.f32.mrb[12].mxu0  ;;  %v777_v29 = vpop.f32.mrb[12].mxu1 }
 0x181   : > { %v783_v30 = vadd.f32 %v736_v28, %v672_v19  ;;  %v785_v31 = vadd.f32 %v777_v29, %v674_v21  ;;  %v738_v32 = vpop.f32.mrb[13].mxu0  ;;  %v1756_v33 = vpop.f32.mrb[13].mxu1  ;;  %v1367_v21 = vsub.s32 0, %v1366_v20 }
 0x182   : > { %v784_v34 = vadd.f32 %v738_v32, %v673_v23  ;;  %v740_v35 = vpop.f32.mrb[14].mxu0  ;;  %v780_v36 = vpop.f32.mrb[14].mxu1 }
 0x183   : > { %v741_v37 = vpop.f32.mrb[15].mxu0  ;;  %v1757_v38 = vpop.f32.mrb[15].mxu1  ;;  %v1368_v35 = vrot.slane %v1363_v26, %v1367_v21 }
 0x184   : > { %v1355_v23 = vpop.permute.xlu0 %1354 }
 0x188   : > { %v842_v39 = vpop.f32.mrb[16].mxu0  ;;  %v883_v40 = vpop.f32.mrb[16].mxu1 }
 0x189   : > { %v889_v41 = vadd.f32 %v842_v39, %v783_v30  ;;  %v891_v42 = vadd.f32 %v883_v40, %v785_v31  ;;  %v844_v43 = vpop.f32.mrb[17].mxu0  ;;  %v1762_v44 = vpop.f32.mrb[17].mxu1  ;;  %v1372_v40 = vrot.slane %v1363_v26, %v1371_v27 }
 0x18a   : > { %v890_v45 = vadd.f32 %v844_v43, %v784_v34  ;;  %v846_v46 = vpop.f32.mrb[18].mxu0  ;;  %v886_v47 = vpop.f32.mrb[18].mxu1 }
 0x18b   : > { %v847_v48 = vpop.f32.mrb[19].mxu0  ;;  %v1763_v49 = vpop.f32.mrb[19].mxu1 }
 0x190   : > { %v953_v10 = vpop.f32.mrb[20].mxu0  ;;  %v994_v50 = vpop.f32.mrb[20].mxu1 }
 0x191   : > { %v1000_v51 = vadd.f32 %v953_v10, %v889_v41  ;;  %v1002_v52 = vadd.f32 %v994_v50, %v891_v42  ;;  %v955_v53 = vpop.f32.mrb[21].mxu0  ;;  %v1768_v54 = vpop.f32.mrb[21].mxu1 }
 0x192   : > { %v1001_v55 = vadd.f32 %v955_v53, %v890_v45  ;;  %v957_v56 = vpop.f32.mrb[22].mxu0  ;;  %v997_v57 = vpop.f32.mrb[22].mxu1 }
 0x193   : > { %v958_v58 = vpop.f32.mrb[23].mxu0  ;;  %v1769_v59 = vpop.f32.mrb[23].mxu1 }
 0x198   : > { %v1064_v60 = vpop.f32.mrb[24].mxu0  ;;  %v1105_v61 = vpop.f32.mrb[24].mxu1 }
 0x199   : > { %v1111_v62 = vadd.f32 %v1064_v60, %v1000_v51  ;;  %v1113_v63 = vadd.f32 %v1105_v61, %v1002_v52  ;;  %v1066_v2 = vpop.f32.mrb[25].mxu0  ;;  %v1774_v3 = vpop.f32.mrb[25].mxu1 }
 0x19a   : > { %v1112_v6 = vadd.f32 %v1066_v2, %v1001_v55  ;;  %v1068_v7 = vpop.f32.mrb[26].mxu0  ;;  %v1108_v5 = vpop.f32.mrb[26].mxu1 }
 0x19b   : > { %v1069_v8 = vpop.f32.mrb[27].mxu0  ;;  %v1775_v11 = vpop.f32.mrb[27].mxu1 }
 0x1a0   : > { %v1175_v0 = vpop.f32.mrb[28].mxu0  ;;  %v1216_v12 = vpop.f32.mrb[28].mxu1 }
 0x1a1   : > { %v1222_v13 = vadd.f32 %v1175_v0, %v1111_v62  ;;  %v1224_v14 = vadd.f32 %v1216_v12, %v1113_v63  ;;  %v1177_v1 = vpop.f32.mrb[29].mxu0  ;;  %v1780_v4 = vpop.f32.mrb[29].mxu1 }
 0x1a2   : > { %v1223_v15 = vadd.f32 %v1177_v1, %v1112_v6  ;;  %v1179_v16 = vpop.f32.mrb[30].mxu0  ;;  %v1219_v17 = vpop.f32.mrb[30].mxu1 }
 0x1a3   : > { %v1180_v18 = vpop.f32.mrb[31].mxu0  ;;  %v1781_v19 = vpop.f32.mrb[31].mxu1 }
 0x1a8   : > { %v1286_v24 = vpop.f32.mrb[32].mxu0  ;;  %v1327_v25 = vpop.f32.mrb[32].mxu1 }
 0x1a9   : > { %v1333_v28 = vadd.f32 %v1286_v24, %v1222_v13  ;;  %v1335_v29 = vadd.f32 %v1327_v25, %v1224_v14  ;;  %v1288_v30 = vpop.f32.mrb[33].mxu0  ;;  %v1786_v31 = vpop.f32.mrb[33].mxu1 }
 0x1aa   : > { %v1334_v32 = vadd.f32 %v1288_v30, %v1223_v15  ;;  %v1290_v33 = vpop.f32.mrb[34].mxu0  ;;  %v1330_v34 = vpop.f32.mrb[34].mxu1 }
 0x1ab   : > { %v1357_v36 = vadd.f32 %v1355_v23, %v1333_v28  ;;  %v1359_v37 = vadd.f32 %v1355_v23, %v1335_v29  ;;  %v1291_v38 = vpop.f32.mrb[35].mxu0  ;;  %v1787_v39 = vpop.f32.mrb[35].mxu1 }
 0x1ac   : > { %v1358_v41 = vadd.f32 %v1355_v23, %v1334_v32 }
 0x1ad   : > { %v1360_v42 = vmax.f32 %v1357_v36, 0.0  ;;  %v1362_v43 = vmax.f32 %v1359_v37, 0.0 }
 0x1ae   : > { %v1361_v44 = vmax.f32 %v1358_v41, 0.0 }
 0x1af   : > { %v1380_v45 = vmul.f32 %v1368_v35, %v1360_v42  ;;  %v1382_v46 = vmul.f32 %v1376_v9, %v1362_v43 }
 0x1b0   : > { %v1381_v47 = vmul.f32 %v1372_v40, %v1361_v44 }
 0x1b1   : > { %1383 = vst [vmem:[%s324_s15] sm:$0xff] %v1380_v45  ;;  %1385 = vst [vmem:[%s324_s15 + $0x10] sm:$0xff] %v1382_v46  ;;  %1412 = vrot.lane.b32.xlu0 %v1380_v45, %s1909_s7  ;;  %1388 = vrot.lane.b32.xlu1 %v1380_v45, %s1909_s7 }
 0x1b2   : > { %1384 = vst [vmem:[%s324_s15 + $0x8] sm:$0xff] %v1381_v47 }
 0x1b5   : > { %1443 = vrot.lane.b32.xlu0 %v1381_v47, %s1909_s7  ;;  %1400 = vrot.lane.b32.xlu1 %v1380_v45, %s1909_s7 }
 0x1b9   : > { %1470 = vrot.lane.b32.xlu0 %v1381_v47, %s1909_s7  ;;  %1425 = vrot.lane.b32.xlu1 %v1381_v47, %s1909_s7 }
 0x1bd   : > { %1486 = vrot.lane.b32.xlu0 %v1382_v46, %s1909_s7  ;;  %1455 = vrot.lane.b32.xlu1 %v1381_v47, %s1909_s7 }
 0x1c1   : > { %1472 = vrot.lane.b32.xlu1 %v1382_v46, %s1909_s7  ;;  %s1914_s7 = smov 29  }
 0x223   : > { %v1413_v48 = vpop.permute.xlu0 %1412  ;;  %v1389_v49 = vpop.permute.xlu1 %1388 }
 0x224   : > { %v1391_v10 = vmax.f32 %v1380_v45, %v1389_v49  ;;  %v1415_v52 = vmax.f32 %v1380_v45, %v1413_v48 }
 0x226   : > { %1393 = vrot.lane.b32.xlu1 %v1391_v10, %s1910_s8  ;;  %s1915_s8 = smov 9  }
 0x227   : > { %v1444_v50 = vpop.permute.xlu0 %1443  ;;  %v1401_v51 = vpop.permute.xlu1 %1400 }
 0x228   : > { %v1403_v53 = vmax.f32 %v1380_v45, %v1401_v51  ;;  %v1446_v59 = vmax.f32 %v1381_v47, %v1444_v50 }
 0x22a   : > { %1417 = vrot.lane.b32.xlu1 %v1415_v52, %s1911_s16  ;;  %1405 = vrot.lane.b32.xlu0 %v1403_v53, %s1912_s17 }
 0x22b   : > { %v1471_v54 = vpop.permute.xlu0 %1470  ;;  %v1426_v55 = vpop.permute.xlu1 %1425 }
 0x22c   : > { %v1428_v56 = vmax.f32 %v1380_v45, %v1426_v55  ;;  %v1429_v57 = vmax.f32 %v1381_v47, %v1426_v55 }
 0x22e   : > { %1434 = vrot.lane.b32.xlu1 %v1429_v57, %s1913_s22  ;;  %1432 = vrot.lane.b32.xlu0 %v1428_v56, %s1913_s22 }
 0x22f   : > { %v1456_v58 = vpop.permute.xlu1 %1455  ;;  %v1487_v61 = vpop.permute.xlu0 %1486 }
 0x230   : > { %v1458_v60 = vmax.f32 %v1381_v47, %v1456_v58  ;;  %v1489_v63 = vmax.f32 %v1382_v46, %v1487_v61 }
 0x232   : > { %1448 = vrot.lane.b32.xlu0 %v1446_v59, %s1914_s7  ;;  %1460 = vrot.lane.b32.xlu1 %v1458_v60, %s1915_s8 }
 0x233   : > { %v1473_v62 = vpop.permute.xlu1 %1472 }
 0x234   : > { %v1475_v2 = vsel %vm1474_vm11, %v1471_v54, %v1473_v62 }
 0x235   : > { %v1477_v3 = vmax.f32 %v1381_v47, %v1475_v2 }
 0x236   : > { %1491 = vrot.lane.b32.xlu1 %v1489_v63, %s1916_s23 }
 0x237   : > { %1479 = vrot.lane.b32.xlu0 %v1477_v3, %s1917_s24 }
 0x298   : > { %v1394_v6 = vpop.permute.xlu1 %1393 }
 0x299   : > { %1397 = vst.msk [vmem:[%s331_s28] sm:$0xff] %vm1396_vm12, %v1394_v6 }
 0x29c   : > { %v1406_v7 = vpop.permute.xlu0 %1405  ;;  %v1418_v5 = vpop.permute.xlu1 %1417 }
 0x29d   : > { %1409 = vst.msk [vmem:[%s331_s28] sm:$0xff] %vm1408_vm13, %v1406_v7 }
 0x29e   : > { %1421 = vst.msk [vmem:[%s331_s28] sm:$0xff] %vm1420_vm14, %v1418_v5 }
 0x2a0   : > { %v1433_v8 = vpop.permute.xlu0 %1432  ;;  %v1435_v11 = vpop.permute.xlu1 %1434 }
 0x2a1   : > { %v1437_v0 = vsel %vm1436_vm15, %v1433_v8, %v1435_v11 }
 0x2a2   : > { %1440 = vst.msk [vmem:[%s331_s28] sm:$0xff] %vm1439_vm0, %v1437_v0 }
 0x2a4   : > { %v1449_v12 = vpop.permute.xlu0 %1448  ;;  %v1461_v13 = vpop.permute.xlu1 %1460 }
 0x2a5   : > { %1452 = vst.msk [vmem:[%s331_s28] sm:$0xff] %vm1451_vm1, %v1449_v12 }
 0x2a6   : > { %1464 = vst.msk [vmem:[%s331_s28] sm:$0xff] %vm1463_vm2, %v1461_v13 }
 0x2a8   : > { %v1492_v1 = vpop.permute.xlu1 %1491 }
 0x2a9   : > { %v1480_v14 = vpop.permute.xlu0 %1479 }
 0x2aa   : > { %1483 = vst.msk [vmem:[%s331_s28] sm:$0xff] %vm1482_vm3, %v1480_v14 }
 0x2ab   : > { %1495 = vst.msk [vmem:[%s331_s28] sm:$0xff] %vm1494_vm4, %v1492_v1 }
 0x2ac PF: > { %s16_s20 = sadd.s32 1, %s1898_s20   ;;  %s2167_s18 = smov %s1894_s19 }
 0x2ad   : > { %p13_p5 = scmp.ge.s32.totalorder %s16_s20, 4   ;;  %s2168_s19 = smov %s2170_s21 }
 0x2af   :  { %15 = sbr.rel (!%p13_p5) target bundleno = 2 (0x2), region = 100 }

</bundles_post_ra>
